<compile_context>
chip_gen: v6e
topology: v6e:2x2x1
jax: 0.10.0
libtpu: 0.0.40
codegen_flags: <defaults>
</compile_context>

<pallas_src>
import functools

import jax
import jax.numpy as jnp
from jax.experimental import pallas as pl
from jax.experimental.pallas import tpu as pltpu

NEG_SLOPE = 0.2   # GATConv default negative_slope
NEG_INF = -1e30   # finite "-inf"; safe because every row has a self loop
LANE = 128


def _round_up(x, m):
    return (x + m - 1) // m * m


def fused_gat_kernel(x_ref, adj_ref,
                     w1_ref, as1_ref, ad1_ref, b1_ref,
                     w2_ref, as2_ref, ad2_ref, b2_ref,
                     out_ref,
                     h1_scr, h2_scr, asrc1_scr, asrc2_scr,
                     *, tm):
    """Fused 2-layer GATConv (heads=1).  grid = (layer, dst_row_tile).

    x_ref   : (N, F_in)   padded node features (VMEM-resident, fetched once)
    adj_ref : (tm, N)     int8 edge counts for this destination-row tile
    w*/as*/ad*/b* : per-layer linear weight, att_src (1,F), att_dst (1,F), bias
    out_ref : (tm, F_out) final layer-2 output rows
    h1_scr/h2_scr : (N, F) per-layer source features (persist across the grid)
    asrc*_scr     : (1, N) per-layer source attention logits
    """
    layer = pl.program_id(0)
    i = pl.program_id(1)
    row0 = pl.multiple_of(i * tm, tm)

    # ---- once per layer (first row tile): source-side projections ----------
    @pl.when((layer == 0) & (i == 0))
    def _():
        h1 = jnp.dot(x_ref[...].astype(jnp.bfloat16),
                     w1_ref[...].astype(jnp.bfloat16),
                     preferred_element_type=jnp.float32)            # (N, H)
        h1_scr[...] = h1
        # a_src[j] = <h1[j], att_src1>, laid out (1, N) for row broadcast.
        asrc1_scr[...] = jax.lax.dot_general(
            as1_ref[...], h1, dimension_numbers=(((1,), (1,)), ((), ())),
            preferred_element_type=jnp.float32)

    @pl.when((layer == 1) & (i == 0))
    def _():
        # h2 rows were filled incrementally during layer 0.
        asrc2_scr[...] = jax.lax.dot_general(
            as2_ref[...], h2_scr[...], dimension_numbers=(((1,), (1,)), ((), ())),
            preferred_element_type=jnp.float32)

    # ---- attention + aggregation for tm destination rows --------------------
    def attention_rows(h_scr, asrc_scr, ad_ref, b_ref):
        h_rows = h_scr[pl.ds(row0, tm), :]                           # (tm, F)
        # a_dst on the VPU (mul + lane reduce), not a width-1 MXU matmul.
        a_dst = jnp.sum(h_rows * ad_ref[...], axis=-1, keepdims=True)
        cnt = adj_ref[...].astype(jnp.float32)                       # (tm, N) counts
        s = a_dst + asrc_scr[...]                                    # (tm, N)
        s = jnp.maximum(s, NEG_SLOPE * s)                            # leaky_relu
        s = jnp.where(cnt > 0.0, s, NEG_INF)                         # single masked pass
        m = jnp.max(s, axis=-1, keepdims=True)
        e = cnt * jnp.exp(s - m)                 # counts weight duplicate edges
        den = jnp.sum(e, axis=-1, keepdims=True)
        p = e * pl.reciprocal(den, approx=True)                      # EUP vrcp
        agg = jnp.dot(p.astype(jnp.bfloat16),
                      h_scr[...].astype(jnp.bfloat16),
                      preferred_element_type=jnp.float32)            # (tm, F)
        return agg + b_ref[...]

    @pl.when(layer == 0)
    def _():
        o1 = attention_rows(h1_scr, asrc1_scr, ad1_ref, b1_ref)      # (tm, H)
        # F.elu (exp argument clamped so the dead branch cannot overflow);
        # dropout(p=0.6) is identity in eval mode.
        o1 = jnp.where(o1 > 0.0, o1, jnp.exp(jnp.minimum(o1, 0.0)) - 1.0)
        # Project layer-2 source features now so layer 1 only touches VMEM.
        h2_scr[pl.ds(row0, tm), :] = jnp.dot(
            o1.astype(jnp.bfloat16), w2_ref[...].astype(jnp.bfloat16),
            preferred_element_type=jnp.float32)

    @pl.when(layer == 1)
    def _():
        out_ref[...] = attention_rows(
            h2_scr, asrc2_scr, ad2_ref, b2_ref).astype(out_ref.dtype)


def gib_gatconv_forward(x, adj_cnt, params, *, tm=128):
    """Eval-mode GIB_GATConv forward.  adj_cnt: (N_p, N_p) int8 edge counts."""
    n, f_in = x.shape
    hid = params["w1"].shape[1]
    f_out = params["w2"].shape[1]

    n_p = adj_cnt.shape[0]
    tm = min(tm, n_p)
    assert n_p % tm == 0 and n_p % LANE == 0 and tm % 8 == 0

    f_in_p = _round_up(f_in, LANE)
    h_p = _round_up(hid, LANE)
    f_out_p = _round_up(f_out, LANE)

    def pad2(a, r, c):
        return jnp.zeros((r, c), jnp.float32).at[:a.shape[0], :a.shape[1]].set(a)

    x_p = pad2(x, n_p, f_in_p)
    w1 = pad2(params["w1"], f_in_p, h_p)
    as1 = pad2(params["att_src1"], 1, h_p)
    ad1 = pad2(params["att_dst1"], 1, h_p)
    b1 = pad2(params["bias1"], 1, h_p)
    w2 = pad2(params["w2"], h_p, f_out_p)
    as2 = pad2(params["att_src2"], 1, f_out_p)
    ad2 = pad2(params["att_dst2"], 1, f_out_p)
    b2 = pad2(params["bias2"], 1, f_out_p)

    n_tiles = n_p // tm

    def full(shape):
        return pl.BlockSpec(shape, lambda l, i: (0, 0))

    grid_spec = pltpu.PrefetchScalarGridSpec(
        num_scalar_prefetch=0,
        grid=(2, n_tiles),                                   # (layer, dst row tile)
        in_specs=[
            full((n_p, f_in_p)),                             # x (resident)
            pl.BlockSpec((tm, n_p), lambda l, i: (i, 0)),    # adj row tile (streamed)
            full((f_in_p, h_p)), full((1, h_p)), full((1, h_p)), full((1, h_p)),
            full((h_p, f_out_p)), full((1, f_out_p)), full((1, f_out_p)),
            full((1, f_out_p)),
        ],
        # Layer 0 keeps a constant output block index (no useless flushes);
        # layer 1 writes every row tile exactly once.
        out_specs=pl.BlockSpec((tm, f_out_p), lambda l, i: (i * l, 0)),
        scratch_shapes=[
            pltpu.VMEM((n_p, h_p), jnp.float32),       # h1: layer-1 source feats
            pltpu.VMEM((n_p, f_out_p), jnp.float32),   # h2: layer-2 source feats
            pltpu.VMEM((1, n_p), jnp.float32),         # a_src, layer 1
            pltpu.VMEM((1, n_p), jnp.float32),         # a_src, layer 2
        ],
    )

    out = pl.pallas_call(
        functools.partial(fused_gat_kernel, tm=tm),
        out_shape=jax.ShapeDtypeStruct((n_p, f_out_p), jnp.float32),
        grid_spec=grid_spec,
        compiler_params=pltpu.CompilerParams(
            # Row-tile axis reads per-layer scratch filled at i == 0, so it stays
            # "arbitrary".
            # TODO(synk): hoist source projections so the row axis can be
            # "parallel" across v7x's 2 TensorCores.
            dimension_semantics=("arbitrary", "arbitrary"),
            # Raise toward physical VMEM (128 MiB v5e/v6e, 64 MiB v7x) for big N.
            vmem_limit_bytes=32 * 1024 * 1024,
        ),
    )(x_p, adj_cnt, w1, as1, ad1, b1, w2, as2, ad2, b2)

    return out[:n, :f_out]


def build_dense_adj(edge_index, num_nodes, num_nodes_padded):
    """Dense int8 edge-count matrix adj[dst, src] with PyG-style self loops.

    Duplicate (non-self) edges keep their multiplicity so the in-kernel softmax
    matches PyG's edge-list softmax; existing self loops are replaced by exactly
    one per node (GATConv does remove_self_loops + add_self_loops).
    """
    src, dst = edge_index[0], edge_index[1]
    cnt = jnp.zeros((num_nodes_padded, num_nodes_padded), jnp.int32)
    cnt = cnt.at[dst, src].add(1)
    eye = jnp.eye(num_nodes_padded, dtype=jnp.int32)
    cnt = cnt * (1 - eye) + eye      # exactly one self loop per row (incl. padded rows)
    # TODO(synk): >127 duplicates of a single edge would overflow int8.
    return jnp.clip(cnt, 0, 127).astype(jnp.int8)


def init_params(key, in_channels, hidden_channels, out_channels):
    ks = jax.random.split(key, 6)

    def glorot(k, shape):
        fan_in, fan_out = shape[0], shape[-1]
        scale = jnp.sqrt(6.0 / (fan_in + fan_out))
        return jax.random.uniform(k, shape, jnp.float32, -scale, scale)

    return {
        # conv1: GATConv(in_channels, hidden_channels, heads=1)
        "w1": glorot(ks[0], (in_channels, hidden_channels)),
        "att_src1": glorot(ks[1], (1, hidden_channels)),
        "att_dst1": glorot(ks[2], (1, hidden_channels)),
        "bias1": jnp.zeros((1, hidden_channels), jnp.float32),
        # conv2: GATConv(hidden_channels, out_channels, heads=1, concat=False)
        "w2": glorot(ks[3], (hidden_channels, out_channels)),
        "att_src2": glorot(ks[4], (1, out_channels)),
        "att_dst2": glorot(ks[5], (1, out_channels)),
        "bias2": jnp.zeros((1, out_channels), jnp.float32),
    }


if __name__ == "__main__":
    key = jax.random.PRNGKey(0)
    k_x, k_e, k_p = jax.random.split(key, 3)

    num_nodes = 64
    in_channels, hidden_channels, out_channels = 16, 32, 8
    num_edges = 256
    tm = 128

    x = jax.random.normal(k_x, (num_nodes, in_channels), jnp.float32)
    edge_index = jax.random.randint(k_e, (2, num_edges), 0, num_nodes,
                                    dtype=jnp.int32)

    n_padded = _round_up(max(num_nodes, tm), tm)
    adj = build_dense_adj(edge_index, num_nodes, n_padded)
    params = init_params(k_p, in_channels, hidden_channels, out_channels)

    out = gib_gatconv_forward(x, adj, params, tm=tm)
    out = jax.block_until_ready(out)
    assert out.shape == (num_nodes, out_channels)
    assert bool(jnp.all(jnp.isfinite(out)))
    print("KERNEL_OK")
</pallas_src>

<mosaic_0001>
module attributes {stable_mosaic.version = 11 : i64} {
  func.func @fused_gat_kernel(%arg0: i32, %arg1: i32, %arg2: memref<128x128xf32, #tpu.memory_space<vmem>>, %arg3: memref<128x128xi8, #tpu.memory_space<vmem>>, %arg4: memref<128x128xf32, #tpu.memory_space<vmem>>, %arg5: memref<1x128xf32, #tpu.memory_space<vmem>>, %arg6: memref<1x128xf32, #tpu.memory_space<vmem>>, %arg7: memref<1x128xf32, #tpu.memory_space<vmem>>, %arg8: memref<128x128xf32, #tpu.memory_space<vmem>>, %arg9: memref<1x128xf32, #tpu.memory_space<vmem>>, %arg10: memref<1x128xf32, #tpu.memory_space<vmem>>, %arg11: memref<1x128xf32, #tpu.memory_space<vmem>>, %arg12: memref<128x128xf32, #tpu.memory_space<vmem>>, %arg13: memref<128x128xf32, #tpu.memory_space<vmem>>, %arg14: memref<128x128xf32, #tpu.memory_space<vmem>>, %arg15: memref<1x128xf32, #tpu.memory_space<vmem>>, %arg16: memref<1x128xf32, #tpu.memory_space<vmem>>) attributes {dimension_semantics = [#tpu.dimension_semantics<arbitrary>, #tpu.dimension_semantics<arbitrary>], iteration_bounds = array<i64: 2, 1>, scalar_prefetch = 0 : i64, scratch_operands = 4 : i64, tpu.core_type = #tpu.core_type<tc>, window_params = [{pipeline_mode = #tpu.pipeline_mode<synchronous>, transform_indices = @transform_0, window_bounds = array<i64: 128, 128>}, {transform_indices = @transform_1, window_bounds = array<i64: 128, 128>}, {pipeline_mode = #tpu.pipeline_mode<synchronous>, transform_indices = @transform_2, window_bounds = array<i64: 128, 128>}, {pipeline_mode = #tpu.pipeline_mode<synchronous>, transform_indices = @transform_3, window_bounds = array<i64: 1, 128>}, {pipeline_mode = #tpu.pipeline_mode<synchronous>, transform_indices = @transform_4, window_bounds = array<i64: 1, 128>}, {pipeline_mode = #tpu.pipeline_mode<synchronous>, transform_indices = @transform_5, window_bounds = array<i64: 1, 128>}, {pipeline_mode = #tpu.pipeline_mode<synchronous>, transform_indices = @transform_6, window_bounds = array<i64: 128, 128>}, {pipeline_mode = #tpu.pipeline_mode<synchronous>, transform_indices = @transform_7, window_bounds = array<i64: 1, 128>}, {pipeline_mode = #tpu.pipeline_mode<synchronous>, transform_indices = @transform_8, window_bounds = array<i64: 1, 128>}, {pipeline_mode = #tpu.pipeline_mode<synchronous>, transform_indices = @transform_9, window_bounds = array<i64: 1, 128>}, {transform_indices = @transform_10, window_bounds = array<i64: 128, 128>}]} {
    %c128_i32 = arith.constant 128 : i32
    %0 = arith.muli %arg1, %c128_i32 : i32
    %1 = tpu.assume_multiple %0, 128 : i32
    %c0_i32 = arith.constant 0 : i32
    %2 = arith.cmpi eq, %arg0, %c0_i32 : i32
    %c0_i32_0 = arith.constant 0 : i32
    %3 = arith.cmpi eq, %arg1, %c0_i32_0 : i32
    %4 = arith.andi %2, %3 : i1
    %5 = arith.extui %4 : i1 to i32
    %c0_i32_1 = arith.constant 0 : i32
    %6 = arith.cmpi ne, %5, %c0_i32_1 : i32
    scf.if %6 {
      %c0 = arith.constant 0 : index
      %c0_8 = arith.constant 0 : index
      %18 = vector.load %arg2[%c0, %c0_8] : memref<128x128xf32, #tpu.memory_space<vmem>>, vector<128x128xf32>
      %19 = arith.truncf %18 : vector<128x128xf32> to vector<128x128xbf16>
      %c0_9 = arith.constant 0 : index
      %c0_10 = arith.constant 0 : index
      %20 = vector.load %arg4[%c0_9, %c0_10] : memref<128x128xf32, #tpu.memory_space<vmem>>, vector<128x128xf32>
      %21 = arith.truncf %20 : vector<128x128xf32> to vector<128x128xbf16>
      %cst = arith.constant dense<0.000000e+00> : vector<128x128xf32>
      %22 = tpu.matmul %19, %21, %cst {dimension_numbers = #tpu.dot_dimension_numbers<[1], [0], [0], [1], [0, 0, 1, 1], [], []>} : vector<128x128xbf16>, vector<128x128xbf16>, vector<128x128xf32> -> vector<128x128xf32>
      %c0_11 = arith.constant 0 : index
      %c0_12 = arith.constant 0 : index
      %23 = vector.load %arg13[%c0_11, %c0_12] : memref<128x128xf32, #tpu.memory_space<vmem>>, vector<128x128xf32>
      tpu.vector_store %arg13[%c0_11, %c0_12], %22 {strides = array<i32>} : memref<128x128xf32, #tpu.memory_space<vmem>>, vector<128x128xf32>,
      %c0_13 = arith.constant 0 : index
      %c0_14 = arith.constant 0 : index
      %24 = vector.load %arg5[%c0_13, %c0_14] : memref<1x128xf32, #tpu.memory_space<vmem>>, vector<1x128xf32>
      %cst_15 = arith.constant dense<0.000000e+00> : vector<1x128xf32>
      %25 = tpu.matmul %24, %22, %cst_15 {dimension_numbers = #tpu.dot_dimension_numbers<[1], [1], [0], [0], [0, 0, 1, 0], [], []>} : vector<1x128xf32>, vector<128x128xf32>, vector<1x128xf32> -> vector<1x128xf32>
      %c0_16 = arith.constant 0 : index
      %c0_17 = arith.constant 0 : index
      %26 = vector.load %arg15[%c0_16, %c0_17] : memref<1x128xf32, #tpu.memory_space<vmem>>, vector<1x128xf32>
      tpu.vector_store %arg15[%c0_16, %c0_17], %25 {strides = array<i32>} : memref<1x128xf32, #tpu.memory_space<vmem>>, vector<1x128xf32>,
    } else {
    }
    %c1_i32 = arith.constant 1 : i32
    %7 = arith.cmpi eq, %arg0, %c1_i32 : i32
    %c0_i32_2 = arith.constant 0 : i32
    %8 = arith.cmpi eq, %arg1, %c0_i32_2 : i32
    %9 = arith.andi %7, %8 : i1
    %10 = arith.extui %9 : i1 to i32
    %c0_i32_3 = arith.constant 0 : i32
    %11 = arith.cmpi ne, %10, %c0_i32_3 : i32
    scf.if %11 {
      %c0 = arith.constant 0 : index
      %c0_8 = arith.constant 0 : index
      %18 = vector.load %arg9[%c0, %c0_8] : memref<1x128xf32, #tpu.memory_space<vmem>>, vector<1x128xf32>
      %c0_9 = arith.constant 0 : index
      %c0_10 = arith.constant 0 : index
      %19 = vector.load %arg14[%c0_9, %c0_10] : memref<128x128xf32, #tpu.memory_space<vmem>>, vector<128x128xf32>
      %cst = arith.constant dense<0.000000e+00> : vector<1x128xf32>
      %20 = tpu.matmul %18, %19, %cst {dimension_numbers = #tpu.dot_dimension_numbers<[1], [1], [0], [0], [0, 0, 1, 0], [], []>} : vector<1x128xf32>, vector<128x128xf32>, vector<1x128xf32> -> vector<1x128xf32>
      %c0_11 = arith.constant 0 : index
      %c0_12 = arith.constant 0 : index
      %21 = vector.load %arg16[%c0_11, %c0_12] : memref<1x128xf32, #tpu.memory_space<vmem>>, vector<1x128xf32>
      tpu.vector_store %arg16[%c0_11, %c0_12], %20 {strides = array<i32>} : memref<1x128xf32, #tpu.memory_space<vmem>>, vector<1x128xf32>,
    } else {
    }
    %c0_i32_4 = arith.constant 0 : i32
    %12 = arith.cmpi eq, %arg0, %c0_i32_4 : i32
    %13 = arith.extui %12 : i1 to i32
    %c0_i32_5 = arith.constant 0 : i32
    %14 = arith.cmpi ne, %13, %c0_i32_5 : i32
    scf.if %14 {
      %18 = arith.index_cast %1 : i32 to index
      %c0 = arith.constant 0 : index
      %19 = vector.load %arg13[%18, %c0] : memref<128x128xf32, #tpu.memory_space<vmem>>, vector<128x128xf32>
      %c0_8 = arith.constant 0 : index
      %c0_9 = arith.constant 0 : index
      %20 = vector.load %arg6[%c0_8, %c0_9] : memref<1x128xf32, #tpu.memory_space<vmem>>, vector<1x128xf32>
      %21 = vector.broadcast %20 : vector<1x128xf32> to vector<128x128xf32>
      %22 = arith.mulf %19, %21 : vector<128x128xf32>
      %cst = arith.constant dense<0.000000e+00> : vector<128xf32>
      %23 = vector.multi_reduction <add>, %22, %cst [1] : vector<128x128xf32> to vector<128xf32>
      %24 = vector.shape_cast %23 : vector<128xf32> to vector<128x1xf32>
      %c0_10 = arith.constant 0 : index
      %c0_11 = arith.constant 0 : index
      %25 = vector.load %arg3[%c0_10, %c0_11] : memref<128x128xi8, #tpu.memory_space<vmem>>, vector<128x128xi8>
      %26 = arith.sitofp %25 : vector<128x128xi8> to vector<128x128xf32>
      %c0_12 = arith.constant 0 : index
      %c0_13 = arith.constant 0 : index
      %27 = vector.load %arg15[%c0_12, %c0_13] : memref<1x128xf32, #tpu.memory_space<vmem>>, vector<1x128xf32>
      %28 = vector.broadcast %24 : vector<128x1xf32> to vector<128x128xf32>
      %29 = vector.broadcast %27 : vector<1x128xf32> to vector<128x128xf32>
      %30 = arith.addf %28, %29 : vector<128x128xf32>
      %cst_14 = arith.constant 2.000000e-01 : f32
      %31 = vector.broadcast %cst_14 : f32 to vector<128x128xf32>
      %32 = arith.mulf %31, %30 : vector<128x128xf32>
      %33 = arith.maximumf %30, %32 : vector<128x128xf32>
      %cst_15 = arith.constant 0.000000e+00 : f32
      %34 = vector.broadcast %cst_15 : f32 to vector<128x128xf32>
      %35 = arith.cmpf ogt, %26, %34 : vector<128x128xf32>
      %cst_16 = arith.constant -1.000000e+30 : f32
      %36 = vector.broadcast %cst_16 : f32 to vector<128x128xf32>
      %37 = arith.select %35, %33, %36 : vector<128x128xi1>, vector<128x128xf32>
      %cst_17 = arith.constant dense<0xFF800000> : vector<128xf32>
      %38 = vector.multi_reduction <maximumf>, %37, %cst_17 [1] : vector<128x128xf32> to vector<128xf32>
      %39 = vector.shape_cast %38 : vector<128xf32> to vector<128x1xf32>
      %40 = vector.broadcast %39 : vector<128x1xf32> to vector<128x128xf32>
      %41 = arith.subf %37, %40 : vector<128x128xf32>
      %42 = math.exp %41 : vector<128x128xf32>
      %43 = arith.mulf %26, %42 : vector<128x128xf32>
      %cst_18 = arith.constant dense<0.000000e+00> : vector<128xf32>
      %44 = vector.multi_reduction <add>, %43, %cst_18 [1] : vector<128x128xf32> to vector<128xf32>
      %45 = vector.shape_cast %44 : vector<128xf32> to vector<128x1xf32>
      %46 = tpu.reciprocal %45 {approx = true} : vector<128x1xf32> -> vector<128x1xf32>
      %47 = vector.broadcast %46 : vector<128x1xf32> to vector<128x128xf32>
      %48 = arith.mulf %43, %47 : vector<128x128xf32>
      %49 = arith.truncf %48 : vector<128x128xf32> to vector<128x128xbf16>
      %c0_19 = arith.constant 0 : index
      %c0_20 = arith.constant 0 : index
      %50 = vector.load %arg13[%c0_19, %c0_20] : memref<128x128xf32, #tpu.memory_space<vmem>>, vector<128x128xf32>
      %51 = arith.truncf %50 : vector<128x128xf32> to vector<128x128xbf16>
      %cst_21 = arith.constant dense<0.000000e+00> : vector<128x128xf32>
      %52 = tpu.matmul %49, %51, %cst_21 {dimension_numbers = #tpu.dot_dimension_numbers<[1], [0], [0], [1], [0, 0, 1, 1], [], []>} : vector<128x128xbf16>, vector<128x128xbf16>, vector<128x128xf32> -> vector<128x128xf32>
      %c0_22 = arith.constant 0 : index
      %c0_23 = arith.constant 0 : index
      %53 = vector.load %arg7[%c0_22, %c0_23] : memref<1x128xf32, #tpu.memory_space<vmem>>, vector<1x128xf32>
      %54 = vector.broadcast %53 : vector<1x128xf32> to vector<128x128xf32>
      %55 = arith.addf %52, %54 : vector<128x128xf32>
      %cst_24 = arith.constant 0.000000e+00 : f32
      %56 = vector.broadcast %cst_24 : f32 to vector<128x128xf32>
      %57 = arith.cmpf ogt, %55, %56 : vector<128x128xf32>
      %cst_25 = arith.constant 0.000000e+00 : f32
      %58 = vector.broadcast %cst_25 : f32 to vector<128x128xf32>
      %59 = arith.minimumf %55, %58 : vector<128x128xf32>
      %60 = math.exp %59 : vector<128x128xf32>
      %cst_26 = arith.constant 1.000000e+00 : f32
      %61 = vector.broadcast %cst_26 : f32 to vector<128x128xf32>
      %62 = arith.subf %60, %61 : vector<128x128xf32>
      %63 = arith.select %57, %55, %62 : vector<128x128xi1>, vector<128x128xf32>
      %64 = arith.truncf %63 : vector<128x128xf32> to vector<128x128xbf16>
      %c0_27 = arith.constant 0 : index
      %c0_28 = arith.constant 0 : index
      %65 = vector.load %arg8[%c0_27, %c0_28] : memref<128x128xf32, #tpu.memory_space<vmem>>, vector<128x128xf32>
      %66 = arith.truncf %65 : vector<128x128xf32> to vector<128x128xbf16>
      %cst_29 = arith.constant dense<0.000000e+00> : vector<128x128xf32>
      %67 = tpu.matmul %64, %66, %cst_29 {dimension_numbers = #tpu.dot_dimension_numbers<[1], [0], [0], [1], [0, 0, 1, 1], [], []>} : vector<128x128xbf16>, vector<128x128xbf16>, vector<128x128xf32> -> vector<128x128xf32>
      %68 = arith.index_cast %1 : i32 to index
      %c0_30 = arith.constant 0 : index
      %69 = vector.load %arg14[%68, %c0_30] : memref<128x128xf32, #tpu.memory_space<vmem>>, vector<128x128xf32>
      tpu.vector_store %arg14[%68, %c0_30], %67 {strides = array<i32>} : memref<128x128xf32, #tpu.memory_space<vmem>>, vector<128x128xf32>,
    } else {
    }
    %c1_i32_6 = arith.constant 1 : i32
    %15 = arith.cmpi eq, %arg0, %c1_i32_6 : i32
    %16 = arith.extui %15 : i1 to i32
    %c0_i32_7 = arith.constant 0 : i32
    %17 = arith.cmpi ne, %16, %c0_i32_7 : i32
    scf.if %17 {
      %18 = arith.index_cast %1 : i32 to index
      %c0 = arith.constant 0 : index
      %19 = vector.load %arg14[%18, %c0] : memref<128x128xf32, #tpu.memory_space<vmem>>, vector<128x128xf32>
      %c0_8 = arith.constant 0 : index
      %c0_9 = arith.constant 0 : index
      %20 = vector.load %arg10[%c0_8, %c0_9] : memref<1x128xf32, #tpu.memory_space<vmem>>, vector<1x128xf32>
      %21 = vector.broadcast %20 : vector<1x128xf32> to vector<128x128xf32>
      %22 = arith.mulf %19, %21 : vector<128x128xf32>
      %cst = arith.constant dense<0.000000e+00> : vector<128xf32>
      %23 = vector.multi_reduction <add>, %22, %cst [1] : vector<128x128xf32> to vector<128xf32>
      %24 = vector.shape_cast %23 : vector<128xf32> to vector<128x1xf32>
      %c0_10 = arith.constant 0 : index
      %c0_11 = arith.constant 0 : index
      %25 = vector.load %arg3[%c0_10, %c0_11] : memref<128x128xi8, #tpu.memory_space<vmem>>, vector<128x128xi8>
      %26 = arith.sitofp %25 : vector<128x128xi8> to vector<128x128xf32>
      %c0_12 = arith.constant 0 : index
      %c0_13 = arith.constant 0 : index
      %27 = vector.load %arg16[%c0_12, %c0_13] : memref<1x128xf32, #tpu.memory_space<vmem>>, vector<1x128xf32>
      %28 = vector.broadcast %24 : vector<128x1xf32> to vector<128x128xf32>
      %29 = vector.broadcast %27 : vector<1x128xf32> to vector<128x128xf32>
      %30 = arith.addf %28, %29 : vector<128x128xf32>
      %cst_14 = arith.constant 2.000000e-01 : f32
      %31 = vector.broadcast %cst_14 : f32 to vector<128x128xf32>
      %32 = arith.mulf %31, %30 : vector<128x128xf32>
      %33 = arith.maximumf %30, %32 : vector<128x128xf32>
      %cst_15 = arith.constant 0.000000e+00 : f32
      %34 = vector.broadcast %cst_15 : f32 to vector<128x128xf32>
      %35 = arith.cmpf ogt, %26, %34 : vector<128x128xf32>
      %cst_16 = arith.constant -1.000000e+30 : f32
      %36 = vector.broadcast %cst_16 : f32 to vector<128x128xf32>
      %37 = arith.select %35, %33, %36 : vector<128x128xi1>, vector<128x128xf32>
      %cst_17 = arith.constant dense<0xFF800000> : vector<128xf32>
      %38 = vector.multi_reduction <maximumf>, %37, %cst_17 [1] : vector<128x128xf32> to vector<128xf32>
      %39 = vector.shape_cast %38 : vector<128xf32> to vector<128x1xf32>
      %40 = vector.broadcast %39 : vector<128x1xf32> to vector<128x128xf32>
      %41 = arith.subf %37, %40 : vector<128x128xf32>
      %42 = math.exp %41 : vector<128x128xf32>
      %43 = arith.mulf %26, %42 : vector<128x128xf32>
      %cst_18 = arith.constant dense<0.000000e+00> : vector<128xf32>
      %44 = vector.multi_reduction <add>, %43, %cst_18 [1] : vector<128x128xf32> to vector<128xf32>
      %45 = vector.shape_cast %44 : vector<128xf32> to vector<128x1xf32>
      %46 = tpu.reciprocal %45 {approx = true} : vector<128x1xf32> -> vector<128x1xf32>
      %47 = vector.broadcast %46 : vector<128x1xf32> to vector<128x128xf32>
      %48 = arith.mulf %43, %47 : vector<128x128xf32>
      %49 = arith.truncf %48 : vector<128x128xf32> to vector<128x128xbf16>
      %c0_19 = arith.constant 0 : index
      %c0_20 = arith.constant 0 : index
      %50 = vector.load %arg14[%c0_19, %c0_20] : memref<128x128xf32, #tpu.memory_space<vmem>>, vector<128x128xf32>
      %51 = arith.truncf %50 : vector<128x128xf32> to vector<128x128xbf16>
      %cst_21 = arith.constant dense<0.000000e+00> : vector<128x128xf32>
      %52 = tpu.matmul %49, %51, %cst_21 {dimension_numbers = #tpu.dot_dimension_numbers<[1], [0], [0], [1], [0, 0, 1, 1], [], []>} : vector<128x128xbf16>, vector<128x128xbf16>, vector<128x128xf32> -> vector<128x128xf32>
      %c0_22 = arith.constant 0 : index
      %c0_23 = arith.constant 0 : index
      %53 = vector.load %arg11[%c0_22, %c0_23] : memref<1x128xf32, #tpu.memory_space<vmem>>, vector<1x128xf32>
      %54 = vector.broadcast %53 : vector<1x128xf32> to vector<128x128xf32>
      %55 = arith.addf %52, %54 : vector<128x128xf32>
      %c0_24 = arith.constant 0 : index
      %c0_25 = arith.constant 0 : index
      %56 = vector.load %arg12[%c0_24, %c0_25] : memref<128x128xf32, #tpu.memory_space<vmem>>, vector<128x128xf32>
      tpu.vector_store %arg12[%c0_24, %c0_25], %55 {strides = array<i32>} : memref<128x128xf32, #tpu.memory_space<vmem>>, vector<128x128xf32>,
    } else {
    }
    return
  }
  func.func @transform_0(%arg0: i32, %arg1: i32) -> (i32, i32) {
    %c0_i32 = arith.constant 0 : i32
    %c0_i32_0 = arith.constant 0 : i32
    %c0_i32_1 = arith.constant 0 : i32
    return %c0_i32, %c0_i32_0 : i32, i32
  }
  func.func @transform_1(%arg0: i32, %arg1: i32) -> (i32, i32) {
    %c0_i32 = arith.constant 0 : i32
    %c0_i32_0 = arith.constant 0 : i32
    return %arg1, %c0_i32 : i32, i32
  }
  func.func @transform_2(%arg0: i32, %arg1: i32) -> (i32, i32) {
    %c0_i32 = arith.constant 0 : i32
    %c0_i32_0 = arith.constant 0 : i32
    %c0_i32_1 = arith.constant 0 : i32
    return %c0_i32, %c0_i32_0 : i32, i32
  }
  func.func @transform_3(%arg0: i32, %arg1: i32) -> (i32, i32) {
    %c0_i32 = arith.constant 0 : i32
    %c0_i32_0 = arith.constant 0 : i32
    %c0_i32_1 = arith.constant 0 : i32
    return %c0_i32, %c0_i32_0 : i32, i32
  }
  func.func @transform_4(%arg0: i32, %arg1: i32) -> (i32, i32) {
    %c0_i32 = arith.constant 0 : i32
    %c0_i32_0 = arith.constant 0 : i32
    %c0_i32_1 = arith.constant 0 : i32
    return %c0_i32, %c0_i32_0 : i32, i32
  }
  func.func @transform_5(%arg0: i32, %arg1: i32) -> (i32, i32) {
    %c0_i32 = arith.constant 0 : i32
    %c0_i32_0 = arith.constant 0 : i32
    %c0_i32_1 = arith.constant 0 : i32
    return %c0_i32, %c0_i32_0 : i32, i32
  }
  func.func @transform_6(%arg0: i32, %arg1: i32) -> (i32, i32) {
    %c0_i32 = arith.constant 0 : i32
    %c0_i32_0 = arith.constant 0 : i32
    %c0_i32_1 = arith.constant 0 : i32
    return %c0_i32, %c0_i32_0 : i32, i32
  }
  func.func @transform_7(%arg0: i32, %arg1: i32) -> (i32, i32) {
    %c0_i32 = arith.constant 0 : i32
    %c0_i32_0 = arith.constant 0 : i32
    %c0_i32_1 = arith.constant 0 : i32
    return %c0_i32, %c0_i32_0 : i32, i32
  }
  func.func @transform_8(%arg0: i32, %arg1: i32) -> (i32, i32) {
    %c0_i32 = arith.constant 0 : i32
    %c0_i32_0 = arith.constant 0 : i32
    %c0_i32_1 = arith.constant 0 : i32
    return %c0_i32, %c0_i32_0 : i32, i32
  }
  func.func @transform_9(%arg0: i32, %arg1: i32) -> (i32, i32) {
    %c0_i32 = arith.constant 0 : i32
    %c0_i32_0 = arith.constant 0 : i32
    %c0_i32_1 = arith.constant 0 : i32
    return %c0_i32, %c0_i32_0 : i32, i32
  }
  func.func @transform_10(%arg0: i32, %arg1: i32) -> (i32, i32) {
    %0 = arith.muli %arg1, %arg0 : i32
    %c0_i32 = arith.constant 0 : i32
    %c0_i32_0 = arith.constant 0 : i32
    return %0, %c0_i32 : i32, i32
  }
}

</mosaic_0001>

<bundles_post_ra>
// kernel: tpu_custom_call.1
= control target key start
LH: loop header
LB: loop body
LE: loop exit
PB: predicated region body
PF: predicated region fallthrough
CT: control target
= control target key end

     0   :  { %15 = vsyncpa [#allocation7], 0  ;;  %s3809_s0 = inlined_call_operand.hbm [shape: f32[128,128], index: 0, kind: input, shape index: {}]   ;;  %s3810_s1 = inlined_call_operand.hbm [shape: s8[128,128], index: 1, kind: input, shape index: {}]   ;;  %s3811_s2 = inlined_call_operand.hbm [shape: f32[128,128], index: 2, kind: input, shape index: {}]   ;;  %s3812_s3 = inlined_call_operand.vmem [shape: f32[1,128], index: 3, kind: input, shape index: {}]   ;;  %s3813_s4 = inlined_call_operand.vmem [shape: f32[1,128], index: 4, kind: input, shape index: {}]   ;;  %s3814_s5 = inlined_call_operand.vmem [shape: f32[1,128], index: 5, kind: input, shape index: {}]   ;;  %s3815_s6 = inlined_call_operand.hbm [shape: f32[128,128], index: 6, kind: input, shape index: {}]   ;;  %s3816_s7 = inlined_call_operand.vmem [shape: f32[1,128], index: 7, kind: input, shape index: {}]   ;;  %s3817_s8 = inlined_call_operand.vmem [shape: f32[1,128], index: 8, kind: input, shape index: {}]   ;;  %s3818_s9 = inlined_call_operand.vmem [shape: f32[1,128], index: 9, kind: input, shape index: {}]   ;;  %s3819_s10 = inlined_call_operand.hbm [shape: f32[128,128], index: 10, kind: output, shape index: {}]  }
   0x1   :  { %16 = vsyncpa [#allocation10], 0 }
   0x2   :  { %17 = vsyncpa [#allocation13], 0 }
   0x3   :  { %18 = vsyncpa [#allocation8], 0 }
   0x4   :  { %20 = vsyncpa [#allocation8 + $0x1], 0  ;;  %s2961_s13 = smov 0   ;;  %s2963_s14 = smov 0  }
   0x5   :  { %s2965_s15 = smov 0  }
   0x6 LB: > { %s2124_s16 = sadd.s32 4294967295, %s2891_s15   ;;  %s2125_s17 = sadd.s32 4294967294, %s2891_s15   ;;  %s2891_s15 = sphi %s2965_s15, %s26_s15   ;;  %s2887_s14 = sphi %s2963_s14, %s3826_s14   ;;  %s2883_s13 = sphi %s2961_s13, %s3825_s13  }
   0x7   : > { %p2126_p0 = scmp.ge.s32.totalorder %s2891_s15, 1  ;;  %p286_p1 = scmp.lt.s32.totalorder %s2891_s15, 3 }
   0x8   : > { %p2982_p2 = scmp.eq.s32.totalorder %s2124_s16, 0  ;;  %s2893_s20 = smov [#allocation9]  }
   0x9   : > { %p2986_p3 = pnand %p2126_p0, %p286_p1  ;;  %s314_s21 = sshll.u32 %s2893_s20, 4  ;;  %s315_s21 = int_to_ptr.vmem [resolvable:$true] %s314_s21 }
   0xa   : > { %s38_s23 = sadd.s32 1, %s2887_s14  ;;  %s2736_s25 = scalar_lea.vmem %s315_s21, 512 }
   0xb   : > { %p2500_p4 = pneg %p2986_p3  ;;  %p2999_p6 = scmp.ge.s32.totalorder %s38_s23, 2 }
   0xc   : > { %p2737_p8 = scmp.ne.s32.totalorder %s315_s21, %s2736_s25  ;;  %p2744_p11 = scmp.lt.s32.totalorder %s315_s21, %s315_s21 }
   0xd   : > { %p2994_p5 = pnand %p2982_p2, %p2500_p4  ;;  %p2745_p12 = scmp.lt.s32.totalorder %s2736_s25, %s2736_s25 }
   0xf   : > { %p2727_p7 = pneg %p2994_p5  ;;  %p2746_p13 = por %p2745_p12, %p2744_p11 }
  0x11   : > { %p2739_p9 = pnand %p2737_p8, %p2727_p7 }
  0x13   : > { %p2740_p10 = pneg %p2739_p9 }
  0x15   : > { %p2747_p0 = pnand %p2746_p13, %p2740_p10 }
  0x17   : > { %2750 = shalt.err (!%p2747_p0)
}
  0x18   : > { %s2894_s26 = smov 128   ;;  %s2895_s27 = smov 8  }
  0x19   : > { %2506 = dma.hbm_to_vmem [thread:$0]  (!%p2994_p5), %s3810_s1, 512, %s315_s21, [#allocation10], %s2894_s26, %s2894_s26, %s2895_s27  }
  0x1a   : > { %s3828_s23 = smov (%p2999_p6, %s38_s23), 0  ;;  %s2896_s30 = smov [#allocation6]  }
  0x1b   : > { %s298_s11 = sshll.u32 %s2896_s30, 4  ;;  %s2897_s12 = smov [#allocation11]   ;;  %s299_s11 = int_to_ptr.vmem [resolvable:$true] %s298_s11 }
  0x1c   : > { %s327_s20 = sshll.u32 %s2897_s12, 4  ;;  %s2762_s25 = scalar_lea.vmem %s299_s11, 2048  ;;  %s328_s20 = int_to_ptr.vmem [resolvable:$true] %s327_s20 }
  0x1d   : > { %p2763_p1 = scmp.ne.s32.totalorder %s299_s11, %s2762_s25  ;;  %p2770_p9 = scmp.lt.s32.totalorder %s299_s11, %s299_s11 }
  0x1e   : > { %p2771_p10 = scmp.lt.s32.totalorder %s2762_s25, %s2762_s25 }
  0x1f   : > { %p2765_p4 = pnand %p2763_p1, %p2727_p7 }
  0x20   : > { %p2772_p11 = por %p2771_p10, %p2770_p9 }
  0x21   : > { %p2766_p8 = pneg %p2765_p4 }
  0x23   : > { %p2773_p12 = pnand %p2772_p11, %p2766_p8 }
  0x25   : > { %2776 = shalt.err (!%p2773_p12)
}
  0x26   : > { %2503 = dma.hbm_to_vmem [thread:$0]  (!%p2994_p5), %s3809_s0, 2048, %s299_s11, [#allocation7], %s2894_s26, %s2894_s26, %s2895_s27  }
  0x27   : > { %s2788_s28 = scalar_lea.vmem %s328_s20, 2048  ;;  %p2796_p1 = scmp.lt.s32.totalorder %s328_s20, %s328_s20 }
  0x28   : > { %p2789_p6 = scmp.ne.s32.totalorder %s328_s20, %s2788_s28  ;;  %p2797_p4 = scmp.lt.s32.totalorder %s2788_s28, %s2788_s28 }
  0x2a   : > { %p2791_p13 = pnand %p2789_p6, %p2727_p7  ;;  %p2798_p8 = por %p2797_p4, %p2796_p1 }
  0x2c   : > { %p2792_p0 = pneg %p2791_p13 }
  0x2e   : > { %p2799_p9 = pnand %p2798_p8, %p2792_p0 }
  0x30   : > { %2802 = shalt.err (!%p2799_p9)
}
  0x31   : > { %2509 = dma.hbm_to_vmem [thread:$0]  (!%p2994_p5), %s3811_s2, 2048, %s328_s20, [#allocation10], %s2894_s26, %s2894_s26, %s2895_s27  }
  0x32   : > { %s2898_s11 = smov [#allocation12]  }
  0x33   : > { %s349_s12 = sshll.u32 %s2898_s11, 4  ;;  %s350_s12 = int_to_ptr.vmem [resolvable:$true] %s349_s12 }
  0x34   : > { %s2814_s25 = scalar_lea.vmem %s350_s12, 2048  ;;  %p2822_p6 = scmp.lt.s32.totalorder %s350_s12, %s350_s12 }
  0x35   : > { %p2815_p10 = scmp.ne.s32.totalorder %s350_s12, %s2814_s25  ;;  %p2823_p13 = scmp.lt.s32.totalorder %s2814_s25, %s2814_s25 }
  0x37   : > { %p2817_p11 = pnand %p2815_p10, %p2727_p7  ;;  %p2824_p0 = por %p2823_p13, %p2822_p6 }
  0x39   : > { %p2818_p12 = pneg %p2817_p11 }
  0x3b   : > { %p2825_p1 = pnand %p2824_p0, %p2818_p12 }
  0x3d   : > { %2828 = shalt.err (!%p2825_p1)
}
  0x3e   : > { %2512 = dma.hbm_to_vmem [thread:$0]  (!%p2994_p5), %s3815_s6, 2048, %s350_s12, [#allocation13], %s2894_s26, %s2894_s26, %s2895_s27  }
  0x3f   : > { %374 = sbr.rel (%p2986_p3) target bundleno = 2493 (0x9bd), region = 60 }
  0x44   : > { %2866 = dma.done.wait (%p2982_p2), [#allocation7], 2048  }
  0x45   : > { %2868 = vsyncadd (%p2982_p2), [#allocation7], 4294965248 }
  0x46   : > { %2870 = dma.done.wait (%p2982_p2), [#allocation10], 2560  }
  0x47   : > { %2872 = vsyncadd (%p2982_p2), [#allocation10], 4294964736 }
  0x48   : > { %2874 = dma.done.wait (%p2982_p2), [#allocation13], 2048  }
  0x49   : > { %2876 = vsyncadd (%p2982_p2), [#allocation13], 4294965248  ;;  %p424_p3 = scmp.eq.s32.totalorder %s2883_s13, 0 }
  0x4a   : > { %v468_v0 = vld [vmem:[#allocation11 + $0x70] sm:$0xff] (%p424_p3)  ;;  %v469_v1 = vld [vmem:[#allocation11 + $0x78] sm:$0xff] (%p424_p3)  ;;  %v466_v2 = vld [vmem:[#allocation11 + $0x60] sm:$0xff] (%p424_p3)  ;;  %v2899_v48 = vmov (%p424_p3), 0.0   ;;  %vm2900_vm0 = vmmov (%p424_p3), 0  }
  0x4b   : > { %429 = sbr.rel (!%p424_p3) target bundleno = 588 (0x24c), region = 80  ;;  %v477_v3 = vpack.c.bf16 (%p424_p3), %v469_v1, %v468_v0  ;;  %v467_v4 = vld [vmem:[#allocation11 + $0x68] sm:$0xff] (%p424_p3)  ;;  %v464_v6 = vld [vmem:[#allocation11 + $0x50] sm:$0xff] (%p424_p3)  ;;  %v465_v7 = vld [vmem:[#allocation11 + $0x58] sm:$0xff] (%p424_p3)  ;;  %2298 = vmatprep.subr.mxu1 (%p424_p3), %v2899_v48  ;;  %2330 = vmatprep.mubr.msk.f32.mxu1 (%p424_p3), %vm2900_vm0, %v2899_v48 }
  0x4c   : > { %v476_v5 = vpack.c.bf16 (%p424_p3), %v467_v4, %v466_v2  ;;  %v475_v8 = vpack.c.bf16 (%p424_p3), %v465_v7, %v464_v6  ;;  %v430_v9 = vld [vmem:[#allocation6] sm:$0xff] (%p424_p3)  ;;  %v431_v10 = vld [vmem:[#allocation6 + $0x8] sm:$0xff] (%p424_p3)  ;;  %v460_v15 = vld [vmem:[#allocation11 + $0x30] sm:$0xff] (%p424_p3) }
  0x4d   : > { %2266 = vmatprep.subr.bf16.mxu0 (%p424_p3), %v477_v3  ;;  %v462_v11 = vld [vmem:[#allocation11 + $0x40] sm:$0xff] (%p424_p3)  ;;  %v463_v12 = vld [vmem:[#allocation11 + $0x48] sm:$0xff] (%p424_p3)  ;;  %v446_v13 = vpack.c.bf16 (%p424_p3), %v431_v10, %v430_v9  ;;  %v461_v16 = vld [vmem:[#allocation11 + $0x38] sm:$0xff] (%p424_p3) }
  0x4e   : > { %2267 = vmatpush3.bf16.msra.mxu0 (%p424_p3), %v477_v3  ;;  %v474_v14 = vpack.c.bf16 (%p424_p3), %v463_v12, %v462_v11  ;;  %v473_v17 = vpack.c.bf16 (%p424_p3), %v461_v16, %v460_v15  ;;  %v458_v18 = vld [vmem:[#allocation11 + $0x20] sm:$0xff] (%p424_p3)  ;;  %v459_v19 = vld [vmem:[#allocation11 + $0x28] sm:$0xff] (%p424_p3)  ;;  %v456_v21 = vld [vmem:[#allocation11 + $0x10] sm:$0xff] (%p424_p3) }
  0x4f   : > { %2268 = vmatprep.subr.bf16.mxu0 (%p424_p3), %v476_v5  ;;  %2282 = vmatprep.mubr.bf16.mxu0 (%p424_p3), %v446_v13  ;;  %v472_v20 = vpack.c.bf16 (%p424_p3), %v459_v19, %v458_v18  ;;  %v457_v22 = vld [vmem:[#allocation11 + $0x18] sm:$0xff] (%p424_p3)  ;;  %v454_v24 = vld [vmem:[#allocation11] sm:$0xff] (%p424_p3)  ;;  %v455_v25 = vld [vmem:[#allocation11 + $0x8] sm:$0xff] (%p424_p3) }
  0x50   : > { %v471_v23 = vpack.c.bf16 %v457_v22, %v456_v21  ;;  %v470_v26 = vpack.c.bf16 %v455_v25, %v454_v24  ;;  %v432_v27 = vld [vmem:[#allocation6 + $0x10] sm:$0xff]  ;;  %v433_v28 = vld [vmem:[#allocation6 + $0x18] sm:$0xff]  ;;  %v434_v29 = vld [vmem:[#allocation6 + $0x20] sm:$0xff] }
  0x51   : > { %v435_v30 = vld [vmem:[#allocation6 + $0x28] sm:$0xff]  ;;  %v447_v31 = vpack.c.bf16 %v433_v28, %v432_v27  ;;  %v436_v33 = vld [vmem:[#allocation6 + $0x30] sm:$0xff]  ;;  %v437_v34 = vld [vmem:[#allocation6 + $0x38] sm:$0xff] }
  0x52   : > { %2269 = vmatpush3.bf16.msra.mxu0 %v476_v5  ;;  %v448_v32 = vpack.c.bf16 %v435_v30, %v434_v29  ;;  %v438_v35 = vld [vmem:[#allocation6 + $0x40] sm:$0xff]  ;;  %v439_v36 = vld [vmem:[#allocation6 + $0x48] sm:$0xff]  ;;  %v449_v37 = vpack.c.bf16 %v437_v34, %v436_v33  ;;  %v440_v39 = vld [vmem:[#allocation6 + $0x50] sm:$0xff] }
  0x53   : > { %2270 = vmatprep.subr.bf16.mxu0 %v475_v8  ;;  %v450_v38 = vpack.c.bf16 %v439_v36, %v438_v35  ;;  %v441_v40 = vld [vmem:[#allocation6 + $0x58] sm:$0xff]  ;;  %v442_v41 = vld [vmem:[#allocation6 + $0x60] sm:$0xff]  ;;  %v443_v42 = vld [vmem:[#allocation6 + $0x68] sm:$0xff] }
  0x54   : > { %v451_v43 = vpack.c.bf16 %v441_v40, %v440_v39  ;;  %v452_v44 = vpack.c.bf16 %v443_v42, %v442_v41  ;;  %v444_v45 = vld [vmem:[#allocation6 + $0x70] sm:$0xff]  ;;  %v445_v46 = vld [vmem:[#allocation6 + $0x78] sm:$0xff] }
  0x55   : > { %v453_v47 = vpack.c.bf16 %v445_v46, %v444_v45  ;;  %v591_v1 = vld [vmem:[%s3812_s3] sm:$0x1] }
  0x56   : > { %2271 = vmatpush3.bf16.msra.mxu0 %v475_v8 }
  0x57   : > { %2272 = vmatprep.subr.bf16.mxu0 %v474_v14 }
  0x5a   : > { %2273 = vmatpush3.bf16.msra.mxu0 %v474_v14 }
  0x5b   : > { %2274 = vmatprep.subr.bf16.mxu0 %v473_v17 }
  0x5e   : > { %2275 = vmatpush3.bf16.msra.mxu0 %v473_v17 }
  0x5f   : > { %2276 = vmatprep.subr.bf16.mxu0 %v472_v20 }
  0x62   : > { %2277 = vmatpush3.bf16.msra.mxu0 %v472_v20 }
  0x63   : > { %2278 = vmatprep.subr.bf16.mxu0 %v471_v23 }
  0x66   : > { %2279 = vmatpush3.bf16.msra.mxu0 %v471_v23 }
  0x67   : > { %2280 = vmatprep.subr.bf16.mxu0 %v470_v26 }
  0x6a   : > { %2281 = vmatpush3.bf16.msra.mxu0 %v470_v26 }
  0x6d   : > { %2283 = vmatmul.mubr.bf16.vlgmr.msra.gmra.mxu0 %v447_v31 }
  0x6e   : > { %2286 = vmatprep.mubr.bf16.mxu0 %v448_v32 }
  0x75   : > { %2287 = vmatmul.mubr.bf16.gmra.mxu0 %v449_v37 }
  0x76   : > { %2290 = vmatprep.mubr.bf16.mxu0 %v450_v38 }
  0x7d   : > { %2291 = vmatmul.mubr.bf16.gmra.mxu0 %v451_v43 }
  0x7e   : > { %2294 = vmatprep.mubr.bf16.mxu0 %v452_v44 }
  0x85   : > { %2295 = vmatmul.mubr.bf16.gmra.mxu0 %v453_v47 }
 0x12d   : > { %v2284_v49 = vpop.f32.mrf.mxu0 }
 0x12e   : > { %577 = vst [vmem:[#allocation2 + $0x58] sm:$0xff] %v2284_v49 }
 0x12f   : > { %v512_v50 = vpop.f32.mrf.mxu0 }
 0x130   : > { %575 = vst [vmem:[#allocation2 + $0x30] sm:$0xff] %v512_v50 }
 0x131   : > { %v2285_v51 = vpop.f32.mrf.mxu0 }
 0x132   : > { %578 = vst [vmem:[#allocation2 + $0x18] sm:$0xff] %v2285_v51 }
 0x133   : > { %v515_v52 = vpop.f32.mrf.mxu0 }
 0x134   : > { %576 = vst [vmem:[#allocation2] sm:$0xff] %v515_v52 }
 0x135   : > { %v2288_v53 = vpop.f32.mrf.mxu0 }
 0x136   : > { %581 = vst [vmem:[#allocation2 + $0x8] sm:$0xff] %v2288_v53 }
 0x137   : > { %v528_v54 = vpop.f32.mrf.mxu0 }
 0x138   : > { %579 = vst [vmem:[#allocation2 + $0x50] sm:$0xff] %v528_v54 }
 0x139   : > { %v2289_v55 = vpop.f32.mrf.mxu0 }
 0x13a   : > { %582 = vst [vmem:[#allocation2 + $0x48] sm:$0xff] %v2289_v55 }
 0x13b   : > { %v531_v56 = vpop.f32.mrf.mxu0 }
 0x13c   : > { %580 = vst [vmem:[#allocation2 + $0x68] sm:$0xff] %v531_v56 }
 0x13d   : > { %v2292_v57 = vpop.f32.mrf.mxu0 }
 0x13e   : > { %585 = vst [vmem:[#allocation2 + $0x10] sm:$0xff] %v2292_v57 }
 0x13f   : > { %v544_v58 = vpop.f32.mrf.mxu0 }
 0x140   : > { %583 = vst [vmem:[#allocation2 + $0x40] sm:$0xff] %v544_v58 }
 0x141   : > { %v2293_v59 = vpop.f32.mrf.mxu0 }
 0x142   : > { %586 = vst [vmem:[#allocation2 + $0x38] sm:$0xff] %v2293_v59 }
 0x143   : > { %v547_v60 = vpop.f32.mrf.mxu0 }
 0x144   : > { %584 = vst [vmem:[#allocation2 + $0x20] sm:$0xff] %v547_v60 }
 0x145   : > { %v2296_v61 = vpop.f32.mrf.mxu0 }
 0x146   : > { %589 = vst [vmem:[#allocation2 + $0x78] sm:$0xff] %v2296_v61 }
 0x147   : > { %v560_v62 = vpop.f32.mrf.mxu0 }
 0x148   : > { %587 = vst [vmem:[#allocation2 + $0x60] sm:$0xff] %v560_v62 }
 0x149   : > { %v2297_v63 = vpop.f32.mrf.mxu0 }
 0x14a   : > { %590 = vst [vmem:[#allocation2 + $0x28] sm:$0xff] %v2297_v63  ;;  %2299 = vmatpush3.xpose.msra.mxu1 %v2297_v63 }
 0x14b   : > { %v563_v0 = vpop.f32.mrf.mxu0  ;;  %2300 = vmatprep.subr.mxu1 %v2899_v48 }
 0x14c   : > { %588 = vst [vmem:[#allocation2 + $0x70] sm:$0xff] %v563_v0 }
 0x14e   : > { %2301 = vmatpush3.xpose.msra.mxu1 %v2296_v61 }
 0x14f   : > { %2302 = vmatprep.subr.mxu1 %v2899_v48 }
 0x152   : > { %2303 = vmatpush3.xpose.msra.mxu1 %v563_v0 }
 0x153   : > { %2304 = vmatprep.subr.mxu1 %v2899_v48 }
 0x156   : > { %2305 = vmatpush3.xpose.msra.mxu1 %v560_v62 }
 0x157   : > { %2306 = vmatprep.subr.mxu1 %v2899_v48 }
 0x15a   : > { %2307 = vmatpush3.xpose.msra.mxu1 %v2293_v59 }
 0x15b   : > { %2308 = vmatprep.subr.mxu1 %v2899_v48 }
 0x15e   : > { %2309 = vmatpush3.xpose.msra.mxu1 %v2292_v57 }
 0x15f   : > { %2310 = vmatprep.subr.mxu1 %v2899_v48 }
 0x162   : > { %2311 = vmatpush3.xpose.msra.mxu1 %v547_v60 }
 0x163   : > { %2312 = vmatprep.subr.mxu1 %v2899_v48 }
 0x166   : > { %2313 = vmatpush3.xpose.msra.mxu1 %v544_v58 }
 0x167   : > { %2314 = vmatprep.subr.mxu1 %v2899_v48 }
 0x16a   : > { %2315 = vmatpush3.xpose.msra.mxu1 %v2289_v55 }
 0x16b   : > { %2316 = vmatprep.subr.mxu1 %v2899_v48 }
 0x16e   : > { %2317 = vmatpush3.xpose.msra.mxu1 %v2288_v53 }
 0x16f   : > { %2318 = vmatprep.subr.mxu1 %v2899_v48 }
 0x172   : > { %2319 = vmatpush3.xpose.msra.mxu1 %v531_v56 }
 0x173   : > { %2320 = vmatprep.subr.mxu1 %v2899_v48 }
 0x176   : > { %2321 = vmatpush3.xpose.msra.mxu1 %v528_v54 }
 0x177   : > { %2322 = vmatprep.subr.mxu1 %v2899_v48 }
 0x17a   : > { %2323 = vmatpush3.xpose.msra.mxu1 %v2285_v51 }
 0x17b   : > { %2324 = vmatprep.subr.mxu1 %v2899_v48 }
 0x17e   : > { %2325 = vmatpush3.xpose.msra.mxu1 %v2284_v49 }
 0x17f   : > { %2326 = vmatprep.subr.mxu1 %v2899_v48 }
 0x182   : > { %2327 = vmatpush3.xpose.msra.mxu1 %v515_v52 }
 0x183   : > { %2328 = vmatprep.subr.mxu1 %v2899_v48 }
 0x186   : > { %2329 = vmatpush3.xpose.msra.mxu1 %v512_v50 }
 0x189   : > { %2331 = vmatmul.mubr.f32.vlgmr.msra.gmra.mxu1 %v591_v1 }
 0x249   : > { %v658_v2 = vpop.f32.mrf.mxu1 }
 0x24a   : > { %662 = vst [vmem:[#allocation4] sm:$0x1] %v658_v2 }
 0x24b   : > { %v2332_v3 = vpop.f32.mrf.mxu1 }
 0x24c PF: > { %p663_p2 = scmp.eq.s32.totalorder %s2883_s13, 1 }
 0x24d   : > { %v684_v4 = vld [vmem:[#allocation3 + $0x50] sm:$0xff] (%p663_p2)  ;;  %v2901_v5 = vmov (%p663_p2), 0.0   ;;  %vm2902_vm1 = vmmov (%p663_p2), 0   ;;  %v683_v6 = vld [vmem:[#allocation3 + $0x60] sm:$0xff] (%p663_p2)  ;;  %v682_v7 = vld [vmem:[#allocation3 + $0x8] sm:$0xff] (%p663_p2) }
 0x24e   : > { %667 = sbr.rel (!%p663_p2) target bundleno = 849 (0x351), region = 84  ;;  %2333 = vmatprep.subr.mxu0 (%p663_p2), %v2901_v5  ;;  %2365 = vmatprep.mubr.msk.f32.mxu0 (%p663_p2), %vm2902_vm1, %v2901_v5  ;;  %v681_v8 = vld [vmem:[#allocation3] sm:$0xff] (%p663_p2)  ;;  %v680_v9 = vld [vmem:[#allocation3 + $0x58] sm:$0xff] (%p663_p2)  ;;  %v675_v14 = vld [vmem:[#allocation3 + $0x70] sm:$0xff] (%p663_p2) }
 0x24f   : > { %2334 = vmatpush3.xpose.msra.mxu0 (%p663_p2), %v684_v4  ;;  %v679_v10 = vld [vmem:[#allocation3 + $0x18] sm:$0xff] (%p663_p2)  ;;  %v677_v12 = vld [vmem:[#allocation3 + $0x20] sm:$0xff] (%p663_p2)  ;;  %v674_v15 = vld [vmem:[#allocation3 + $0x30] sm:$0xff] (%p663_p2) }
 0x250   : > { %2335 = vmatprep.subr.mxu0 (%p663_p2), %v2901_v5  ;;  %v678_v11 = vld [vmem:[#allocation3 + $0x78] sm:$0xff] (%p663_p2)  ;;  %v673_v16 = vld [vmem:[#allocation3 + $0x48] sm:$0xff] (%p663_p2)  ;;  %v672_v17 = vld [vmem:[#allocation3 + $0x40] sm:$0xff] (%p663_p2) }
 0x251   : > { %v676_v13 = vld [vmem:[#allocation3 + $0x38] sm:$0xff] (%p663_p2)  ;;  %v671_v18 = vld [vmem:[#allocation3 + $0x10] sm:$0xff] (%p663_p2)  ;;  %v670_v19 = vld [vmem:[#allocation3 + $0x68] sm:$0xff] (%p663_p2) }
 0x252   : > { %v669_v20 = vld [vmem:[#allocation3 + $0x28] sm:$0xff] (%p663_p2)  ;;  %v668_v21 = vld [vmem:[%s3816_s7] sm:$0x1] (%p663_p2) }
 0x253   : > { %2336 = vmatpush3.xpose.msra.mxu0 %v683_v6 }
 0x254   : > { %2337 = vmatprep.subr.mxu0 %v2901_v5 }
 0x257   : > { %2338 = vmatpush3.xpose.msra.mxu0 %v682_v7 }
 0x258   : > { %2339 = vmatprep.subr.mxu0 %v2901_v5 }
 0x25b   : > { %2340 = vmatpush3.xpose.msra.mxu0 %v681_v8 }
 0x25c   : > { %2341 = vmatprep.subr.mxu0 %v2901_v5 }
 0x25f   : > { %2342 = vmatpush3.xpose.msra.mxu0 %v680_v9 }
 0x260   : > { %2343 = vmatprep.subr.mxu0 %v2901_v5 }
 0x263   : > { %2344 = vmatpush3.xpose.msra.mxu0 %v679_v10 }
 0x264   : > { %2345 = vmatprep.subr.mxu0 %v2901_v5 }
 0x267   : > { %2346 = vmatpush3.xpose.msra.mxu0 %v678_v11 }
 0x268   : > { %2347 = vmatprep.subr.mxu0 %v2901_v5 }
 0x26b   : > { %2348 = vmatpush3.xpose.msra.mxu0 %v677_v12 }
 0x26c   : > { %2349 = vmatprep.subr.mxu0 %v2901_v5 }
 0x26f   : > { %2350 = vmatpush3.xpose.msra.mxu0 %v676_v13 }
 0x270   : > { %2351 = vmatprep.subr.mxu0 %v2901_v5 }
 0x273   : > { %2352 = vmatpush3.xpose.msra.mxu0 %v675_v14 }
 0x274   : > { %2353 = vmatprep.subr.mxu0 %v2901_v5 }
 0x277   : > { %2354 = vmatpush3.xpose.msra.mxu0 %v674_v15 }
 0x278   : > { %2355 = vmatprep.subr.mxu0 %v2901_v5 }
 0x27b   : > { %2356 = vmatpush3.xpose.msra.mxu0 %v673_v16 }
 0x27c   : > { %2357 = vmatprep.subr.mxu0 %v2901_v5 }
 0x27f   : > { %2358 = vmatpush3.xpose.msra.mxu0 %v672_v17 }
 0x280   : > { %2359 = vmatprep.subr.mxu0 %v2901_v5 }
 0x283   : > { %2360 = vmatpush3.xpose.msra.mxu0 %v671_v18 }
 0x284   : > { %2361 = vmatprep.subr.mxu0 %v2901_v5 }
 0x287   : > { %2362 = vmatpush3.xpose.msra.mxu0 %v670_v19 }
 0x288   : > { %2363 = vmatprep.subr.mxu0 %v2901_v5 }
 0x28b   : > { %2364 = vmatpush3.xpose.msra.mxu0 %v669_v20 }
 0x28e   : > { %2366 = vmatmul.mubr.f32.vlgmr.msra.gmra.mxu0 %v668_v21 }
 0x34e   : > { %v751_v22 = vpop.f32.mrf.mxu0 }
 0x34f   : > { %755 = vst [vmem:[#allocation5] sm:$0x1] %v751_v22 }
 0x350   : > { %v2367_v23 = vpop.f32.mrf.mxu0 }
 0x351 PF: > { %p2138_p5 = scmp.ne.s32.totalorder %s2883_s13, 0 }
 0x353   : > { %758 = sbr.rel (%p2138_p5) target bundleno = 1776 (0x6f0), region = 88 }
 0x358   : > { %v3093_v24 = vld [vmem:[#allocation2 + $0x30] sm:$0xff]  ;;  %v2139_v25 = vld [vmem:[%s3813_s4] ss:$0 sm:$0xff]  ;;  %v3098_v26 = vld [vmem:[#allocation2 + $0x58] sm:$0xff] }
 0x359   : > { %v783_v27 = vmul.f32 %v2139_v25, %v3093_v24  ;;  %v785_v28 = vmul.f32 %v2139_v25, %v3098_v26  ;;  %v3102_v29 = vld [vmem:[#allocation2] sm:$0xff]  ;;  %v3104_v30 = vld [vmem:[#allocation2 + $0x18] sm:$0xff]  ;;  %v3108_v33 = vld [vmem:[#allocation2 + $0x50] sm:$0xff] }
 0x35a   : > { %v784_v31 = vmul.f32 %v2139_v25, %v3102_v29  ;;  %v786_v32 = vmul.f32 %v2139_v25, %v3104_v30  ;;  %v3110_v34 = vld [vmem:[#allocation2 + $0x68] sm:$0xff]  ;;  %v787_v35 = vmul.f32 %v2139_v25, %v3108_v33  ;;  %v3120_v41 = vld [vmem:[#allocation2 + $0x40] sm:$0xff]  ;;  %v3126_v45 = vld [vmem:[#allocation2 + $0x10] sm:$0xff] }
 0x35b   : > { %799 = vadd.xlane.f32.xlu0 %v783_v27  ;;  %803 = vadd.xlane.f32.xlu1 %v785_v28  ;;  %v788_v36 = vmul.f32 %v2139_v25, %v3110_v34  ;;  %v3114_v37 = vld [vmem:[#allocation2 + $0x8] sm:$0xff]  ;;  %v3122_v42 = vld [vmem:[#allocation2 + $0x20] sm:$0xff]  ;;  %v791_v43 = vmul.f32 %v2139_v25, %v3120_v41  ;;  %v3128_v46 = vld [vmem:[#allocation2 + $0x38] sm:$0xff]  ;;  %v793_v47 = vmul.f32 %v2139_v25, %v3126_v45 }
 0x35c   : > { %v3116_v38 = vld [vmem:[#allocation2 + $0x48] sm:$0xff]  ;;  %v789_v39 = vmul.f32 %v2139_v25, %v3114_v37  ;;  %v792_v44 = vmul.f32 %v2139_v25, %v3122_v42  ;;  %v794_v48 = vmul.f32 %v2139_v25, %v3128_v46  ;;  %v3132_v49 = vld [vmem:[#allocation2 + $0x60] sm:$0xff]  ;;  %v3134_v50 = vld [vmem:[#allocation2 + $0x70] sm:$0xff] }
 0x35d   : > { %v790_v40 = vmul.f32 %v2139_v25, %v3116_v38  ;;  %v795_v51 = vmul.f32 %v2139_v25, %v3132_v49  ;;  %v796_v52 = vmul.f32 %v2139_v25, %v3134_v50  ;;  %v3138_v53 = vld [vmem:[#allocation2 + $0x78] sm:$0xff]  ;;  %v3140_v54 = vld [vmem:[#allocation2 + $0x28] sm:$0xff]  ;;  %v3144_v59 = vld [vmem:[#allocation4] ss:$0 sm:$0xff] }
 0x35e   : > { %v797_v55 = vmul.f32 %v2139_v25, %v3138_v53  ;;  %v798_v56 = vmul.f32 %v2139_v25, %v3140_v54  ;;  %v831_v57 = vld [vmem:[#allocation9] sm:$0xff]  ;;  %v832_v3 = vld [vmem:[#allocation9 + $0x8] sm:$0xff] }
 0x35f   : > { %801 = vadd.xlane.f32.xlu0 %v784_v31  ;;  %805 = vadd.xlane.f32.xlu1 %v786_v32  ;;  %v835_v58 = vunpack.c.0.s8 %v831_v57  ;;  %v837_v60 = vunpack.c.2.s8 %v831_v57  ;;  %v836_v0 = vunpack.c.1.s8 %v831_v57  ;;  %v838_v5 = vunpack.c.3.s8 %v831_v57 }
 0x360   : > { %v839_v11 = vunpack.c.0.s8 %v832_v3  ;;  %v840_v17 = vunpack.c.1.s8 %v832_v3  ;;  %v841_v25 = vunpack.c.2.s8 %v832_v3  ;;  %v842_v32 = vunpack.c.3.s8 %v832_v3 }
 0x361   : > { %v3146_v63 = vcvt.s32.f32 %v835_v58  ;;  %v3150_v4 = vcvt.s32.f32 %v837_v60  ;;  %v3153_v10 = vcvt.s32.f32 %v836_v0  ;;  %v3158_v16 = vcvt.s32.f32 %v838_v5 }
 0x362   : > { %v3164_v23 = vcvt.s32.f32 %v839_v11  ;;  %v3184_v60 = vcvt.s32.f32 %v842_v32 }
 0x363   : > { %807 = vadd.xlane.f32.xlu0 %v787_v35  ;;  %809 = vadd.xlane.f32.xlu1 %v788_v36  ;;  %vm922_vm2 = vcmp.gt.f32.partialorder %v3146_v63, 0.0  ;;  %vm924_vm3 = vcmp.gt.f32.partialorder %v3150_v4, 0.0  ;;  %vm923_vm4 = vcmp.gt.f32.partialorder %v3153_v10, 0.0  ;;  %v833_v35 = vld [vmem:[#allocation9 + $0x10] sm:$0xff]  ;;  %vm925_vm5 = vcmp.gt.f32.partialorder %v3158_v16, 0.0 }
 0x364   : > { %vm926_vm6 = vcmp.gt.f32.partialorder %v3164_v23, 0.0  ;;  %v844_v0 = vunpack.c.1.s8 %v833_v35  ;;  %vm929_vm9 = vcmp.gt.f32.partialorder %v3184_v60, 0.0 }
 0x367   : > { %811 = vadd.xlane.f32.xlu0 %v789_v39  ;;  %813 = vadd.xlane.f32.xlu1 %v790_v40  ;;  %v3173_v40 = vcvt.s32.f32 %v840_v17  ;;  %v3205_v17 = vcvt.s32.f32 %v844_v0 }
 0x369   : > { %vm927_vm7 = vcmp.gt.f32.partialorder %v3173_v40, 0.0  ;;  %vm931_vm11 = vcmp.gt.f32.partialorder %v3205_v17, 0.0 }
 0x36b   : > { %815 = vadd.xlane.f32.xlu0 %v791_v43  ;;  %817 = vadd.xlane.f32.xlu1 %v792_v44 }
 0x36f   : > { %819 = vadd.xlane.f32.xlu0 %v793_v47  ;;  %821 = vadd.xlane.f32.xlu1 %v794_v48 }
 0x373   : > { %823 = vadd.xlane.f32.xlu0 %v795_v51  ;;  %825 = vadd.xlane.f32.xlu1 %v796_v52  ;;  %v3180_v52 = vcvt.s32.f32 %v841_v25 }
 0x375   : > { %vm928_vm8 = vcmp.gt.f32.partialorder %v3180_v52, 0.0 }
 0x377   : > { %827 = vadd.xlane.f32.xlu0 %v797_v55  ;;  %829 = vadd.xlane.f32.xlu1 %v798_v56  ;;  %v843_v55 = vunpack.c.0.s8 %v833_v35 }
 0x3e4   : > { %v800_v61 = vpop.xlane.xlu0 %799  ;;  %v804_v62 = vpop.xlane.xlu1 %803 }
 0x3e5   : > { %v874_v1 = vadd.f32 %v3144_v59, %v800_v61  ;;  %v876_v2 = vadd.f32 %v3144_v59, %v804_v62 }
 0x3e7   : > { %v890_v6 = vmul.f32 0.2, %v874_v1  ;;  %v892_v7 = vmul.f32 0.2, %v876_v2 }
 0x3e8   : > { %v802_v8 = vpop.xlane.xlu0 %801  ;;  %v806_v9 = vpop.xlane.xlu1 %805 }
 0x3e9   : > { %v875_v12 = vadd.f32 %v3144_v59, %v802_v8  ;;  %v877_v13 = vadd.f32 %v3144_v59, %v806_v9  ;;  %v906_v14 = vmax.f32 %v874_v1, %v890_v6  ;;  %v908_v15 = vmax.f32 %v876_v2, %v892_v7 }
 0x3ea   : > { %v3196_v7 = vcvt.s32.f32 %v843_v55  ;;  %v845_v8 = vunpack.c.2.s8 %v833_v35 }
 0x3eb   : > { %v891_v18 = vmul.f32 0.2, %v875_v12  ;;  %v893_v19 = vmul.f32 0.2, %v877_v13  ;;  %v3160_v20 = vsel %vm922_vm2, %v906_v14, -1e+30 }
 0x3ec   : > { %954 = vmax.xlane.f32.xlu0 %v3160_v20  ;;  %v808_v21 = vpop.xlane.xlu0 %807  ;;  %v810_v22 = vpop.xlane.xlu1 %809  ;;  %v3170_v36 = vsel %vm924_vm3, %v908_v15, -1e+30  ;;  %vm930_vm10 = vcmp.gt.f32.partialorder %v3196_v7, 0.0 }
 0x3ed   : > { %v878_v27 = vadd.f32 %v3144_v59, %v808_v21  ;;  %v879_v28 = vadd.f32 %v3144_v59, %v810_v22  ;;  %v907_v31 = vmax.f32 %v875_v12, %v891_v18  ;;  %v909_v39 = vmax.f32 %v877_v13, %v893_v19  ;;  %v834_v13 = vld [vmem:[#allocation9 + $0x18] sm:$0xff] }
 0x3ee   : > { %v846_v18 = vunpack.c.3.s8 %v833_v35  ;;  %v848_v0 = vunpack.c.1.s8 %v834_v13 }
 0x3ef   : > { %v894_v43 = vmul.f32 0.2, %v878_v27  ;;  %v895_v44 = vmul.f32 0.2, %v879_v28  ;;  %v3175_v47 = vsel %vm923_vm4, %v907_v31, -1e+30  ;;  %v847_v31 = vunpack.c.0.s8 %v834_v13 }
 0x3f0   : > { %958 = vmax.xlane.f32.xlu0 %v3170_v36  ;;  %956 = vmax.xlane.f32.xlu1 %v3175_v47  ;;  %v812_v48 = vpop.xlane.xlu0 %811  ;;  %v814_v51 = vpop.xlane.xlu1 %813  ;;  %v3188_v61 = vsel %vm925_vm5, %v909_v39, -1e+30 }
 0x3f1   : > { %v880_v56 = vadd.f32 %v3144_v59, %v812_v48  ;;  %v881_v57 = vadd.f32 %v3144_v59, %v814_v51  ;;  %v910_v58 = vmax.f32 %v878_v27, %v894_v43  ;;  %v911_v62 = vmax.f32 %v879_v28, %v895_v44 }
 0x3f2   : > { %v3212_v28 = vcvt.s32.f32 %v845_v8  ;;  %v3221_v48 = vcvt.s32.f32 %v846_v18 }
 0x3f3   : > { %v896_v1 = vmul.f32 0.2, %v880_v56  ;;  %v897_v2 = vmul.f32 0.2, %v881_v57  ;;  %v3191_v3 = vsel %vm926_vm6, %v910_v58, -1e+30 }
 0x3f4   : > { %960 = vmax.xlane.f32.xlu1 %v3188_v61  ;;  %962 = vmax.xlane.f32.xlu0 %v3191_v3  ;;  %v816_v5 = vpop.xlane.xlu0 %815  ;;  %v818_v6 = vpop.xlane.xlu1 %817  ;;  %v3203_v14 = vsel %vm927_vm7, %v911_v62, -1e+30  ;;  %vm932_vm12 = vcmp.gt.f32.partialorder %v3212_v28, 0.0  ;;  %v3228_v62 = vcvt.s32.f32 %v847_v31  ;;  %vm933_vm13 = vcmp.gt.f32.partialorder %v3221_v48, 0.0 }
 0x3f5   : > { %v882_v9 = vadd.f32 %v3144_v59, %v816_v5  ;;  %v883_v11 = vadd.f32 %v3144_v59, %v818_v6  ;;  %v912_v12 = vmax.f32 %v880_v56, %v896_v1  ;;  %v913_v15 = vmax.f32 %v881_v57, %v897_v2 }
 0x3f6   : > { %v849_v1 = vunpack.c.2.s8 %v834_v13  ;;  %vm934_vm14 = vcmp.gt.f32.partialorder %v3228_v62, 0.0 }
 0x3f7   : > { %v898_v19 = vmul.f32 0.2, %v882_v9  ;;  %v899_v21 = vmul.f32 0.2, %v883_v11  ;;  %v3207_v22 = vsel %vm928_vm8, %v912_v12, -1e+30 }
 0x3f8   : > { %964 = vmax.xlane.f32.xlu1 %v3203_v14  ;;  %966 = vmax.xlane.f32.xlu0 %v3207_v22  ;;  %v820_v25 = vpop.xlane.xlu0 %819  ;;  %v822_v27 = vpop.xlane.xlu1 %821  ;;  %v3218_v43 = vsel %vm929_vm9, %v913_v15, -1e+30 }
 0x3f9   : > { %v884_v32 = vadd.f32 %v3144_v59, %v820_v25  ;;  %v885_v39 = vadd.f32 %v3144_v59, %v822_v27  ;;  %v914_v35 = vmax.f32 %v882_v9, %v898_v19  ;;  %v915_v44 = vmax.f32 %v883_v11, %v899_v21 }
 0x3fa   : > { %v3242_v21 = vcvt.s32.f32 %v848_v0  ;;  %v3244_v25 = vcvt.s32.f32 %v849_v1  ;;  %v850_v27 = vunpack.c.3.s8 %v834_v13 }
 0x3fb   : > { %v900_v51 = vmul.f32 0.2, %v884_v32  ;;  %v901_v55 = vmul.f32 0.2, %v885_v39  ;;  %v3223_v56 = vsel %vm930_vm10, %v914_v35, -1e+30 }
 0x3fc   : > { %968 = vmax.xlane.f32.xlu1 %v3218_v43  ;;  %970 = vmax.xlane.f32.xlu0 %v3223_v56  ;;  %v824_v57 = vpop.xlane.xlu0 %823  ;;  %v826_v58 = vpop.xlane.xlu1 %825  ;;  %v3234_v8 = vsel %vm931_vm11, %v915_v44, -1e+30  ;;  %vm935_vm15 = vcmp.gt.f32.partialorder %v3242_v21, 0.0  ;;  %vm936_vm0 = vcmp.gt.f32.partialorder %v3244_v25, 0.0  ;;  %v3256_v13 = vcvt.s32.f32 %v850_v27 }
 0x3fd   : > { %v886_v2 = vadd.f32 %v3144_v59, %v824_v57  ;;  %v887_v5 = vadd.f32 %v3144_v59, %v826_v58  ;;  %v916_v6 = vmax.f32 %v884_v32, %v900_v51  ;;  %v917_v9 = vmax.f32 %v885_v39, %v901_v55 }
 0x3fe   : > { %vm937_vm1 = vcmp.gt.f32.partialorder %v3256_v13, 0.0 }
 0x3ff   : > { %v902_v11 = vmul.f32 0.2, %v886_v2  ;;  %v903_v12 = vmul.f32 0.2, %v887_v5  ;;  %v3237_v15 = vsel %vm932_vm12, %v916_v6, -1e+30  ;;  %v1144_v6 = vpack.c.bf16 %v3134_v50, %v3132_v49 }
 0x400   : > { %972 = vmax.xlane.f32.xlu1 %v3234_v8  ;;  %974 = vmax.xlane.f32.xlu0 %v3237_v15  ;;  %v828_v18 = vpop.xlane.xlu0 %827  ;;  %v830_v19 = vpop.xlane.xlu1 %829  ;;  %v3248_v35 = vsel %vm933_vm13, %v917_v9, -1e+30 }
 0x401   : > { %v888_v31 = vadd.f32 %v3144_v59, %v828_v18  ;;  %v889_v32 = vadd.f32 %v3144_v59, %v830_v19  ;;  %v918_v39 = vmax.f32 %v886_v2, %v902_v11  ;;  %v919_v57 = vmax.f32 %v887_v5, %v903_v12 }
 0x402   : > { %v1145_v5 = vpack.c.bf16 %v3140_v54, %v3138_v53 }
 0x403   : > { %v904_v44 = vmul.f32 0.2, %v888_v31  ;;  %v905_v51 = vmul.f32 0.2, %v889_v32  ;;  %v3250_v55 = vsel %vm934_vm14, %v918_v39, -1e+30 }
 0x404   : > { %976 = vmax.xlane.f32.xlu1 %v3248_v35  ;;  %978 = vmax.xlane.f32.xlu0 %v3250_v55  ;;  %v3258_v59 = vsel %vm935_vm15, %v919_v57, -1e+30 }
 0x405   : > { %v920_v58 = vmax.f32 %v888_v31, %v904_v44  ;;  %v921_v1 = vmax.f32 %v889_v32, %v905_v51  ;;  %2368 = vmatprep.subr.bf16.mxu0 %v1145_v5 }
 0x406   : > { %2369 = vmatpush3.bf16.msra.mxu0 %v1145_v5 }
 0x407   : > { %v3260_v0 = vsel %vm936_vm0, %v920_v58, -1e+30  ;;  %v3265_v2 = vsel %vm937_vm1, %v921_v1, -1e+30  ;;  %2370 = vmatprep.subr.bf16.mxu0 %v1144_v6 }
 0x408   : > { %980 = vmax.xlane.f32.xlu1 %v3258_v59  ;;  %982 = vmax.xlane.f32.xlu0 %v3260_v0 }
 0x40a   : > { %2371 = vmatpush3.bf16.msra.mxu0 %v1144_v6 }
 0x40c   : > { %984 = vmax.xlane.f32.xlu1 %v3265_v2 }
 0x475   : > { %v955_v9 = vpop.xlane.xlu0 %954 }
 0x476   : > { %v986_v11 = vsub.f32 %v3160_v20, %v955_v9 }
 0x478   : > { %v1002_v12 = vmul.f32 1.442695, %v986_v11 }
 0x479   : > { %v957_v18 = vpop.xlane.xlu1 %956  ;;  %v959_v19 = vpop.xlane.xlu0 %958 }
 0x47a   : > { %2565 = vpow2.f32 %v1002_v12  ;;  %v987_v27 = vsub.f32 %v3175_v47, %v957_v18  ;;  %v988_v31 = vsub.f32 %v3170_v36, %v959_v19 }
 0x47c   : > { %v1004_v32 = vmul.f32 1.442695, %v987_v27  ;;  %v1006_v53 = vmul.f32 1.442695, %v988_v31 }
 0x47d   : > { %v961_v54 = vpop.xlane.xlu1 %960  ;;  %v963_v39 = vpop.xlane.xlu0 %962 }
 0x47e   : > { %2567 = vpow2.f32 %v1004_v32  ;;  %v989_v49 = vsub.f32 %v3188_v61, %v961_v54  ;;  %v990_v50 = vsub.f32 %v3191_v3, %v963_v39 }
 0x47f   : > { %2569 = vpow2.f32 %v1006_v53 }
 0x480   : > { %v1008_v44 = vmul.f32 1.442695, %v989_v49  ;;  %v1010_v20 = vmul.f32 1.442695, %v990_v50 }
 0x481   : > { %v965_v51 = vpop.xlane.xlu1 %964  ;;  %v967_v57 = vpop.xlane.xlu0 %966 }
 0x482   : > { %2571 = vpow2.f32 %v1008_v44  ;;  %v991_v58 = vsub.f32 %v3203_v14, %v965_v51  ;;  %v992_v47 = vsub.f32 %v3207_v22, %v967_v57 }
 0x483   : > { %2573 = vpow2.f32 %v1010_v20 }
 0x484   : > { %v1012_v36 = vmul.f32 1.442695, %v991_v58  ;;  %v1014_v1 = vmul.f32 1.442695, %v992_v47 }
 0x485   : > { %v969_v5 = vpop.xlane.xlu1 %968  ;;  %v971_v6 = vpop.xlane.xlu0 %970 }
 0x486   : > { %2575 = vpow2.f32 %v1012_v36  ;;  %v993_v61 = vsub.f32 %v3218_v43, %v969_v5  ;;  %v994_v3 = vsub.f32 %v3223_v56, %v971_v6 }
 0x487   : > { %v2566_v9 = vpop.eup %2565  ;;  %2577 = vpow2.f32 %v1014_v1 }
 0x488   : > { %v1016_v11 = vmul.f32 1.442695, %v993_v61  ;;  %v1018_v12 = vmul.f32 1.442695, %v994_v3  ;;  %v3282_v18 = vmul.f32 %v2566_v9, %v3146_v63 }
 0x489   : > { %v973_v14 = vpop.xlane.xlu1 %972  ;;  %v975_v19 = vpop.xlane.xlu0 %974 }
 0x48a   : > { %2579 = vpow2.f32 %v1016_v11  ;;  %v995_v22 = vsub.f32 %v3234_v8, %v973_v14  ;;  %v996_v27 = vsub.f32 %v3237_v15, %v975_v19  ;;  %1050 = vadd.xlane.f32.xlu0 %v3282_v18 }
 0x48b   : > { %v2568_v31 = vpop.eup %2567  ;;  %2581 = vpow2.f32 %v1018_v12 }
 0x48c   : > { %v2570_v43 = vpop.eup %2569  ;;  %v1020_v56 = vmul.f32 1.442695, %v995_v22  ;;  %v1022_v32 = vmul.f32 1.442695, %v996_v27  ;;  %v3288_v53 = vmul.f32 %v2568_v31, %v3153_v10 }
 0x48d   : > { %v977_v54 = vpop.xlane.xlu1 %976  ;;  %v979_v63 = vpop.xlane.xlu0 %978  ;;  %v3291_v39 = vmul.f32 %v2570_v43, %v3150_v4 }
 0x48e   : > { %2583 = vpow2.f32 %v1020_v56  ;;  %v997_v8 = vsub.f32 %v3248_v35, %v977_v54  ;;  %v998_v15 = vsub.f32 %v3250_v55, %v979_v63  ;;  %1052 = vadd.xlane.f32.xlu1 %v3288_v53 }
 0x48f   : > { %v2572_v49 = vpop.eup %2571  ;;  %2585 = vpow2.f32 %v1022_v32  ;;  %1054 = vadd.xlane.f32.xlu0 %v3291_v39 }
 0x490   : > { %v2574_v50 = vpop.eup %2573  ;;  %v1024_v44 = vmul.f32 1.442695, %v997_v8  ;;  %v1026_v10 = vmul.f32 1.442695, %v998_v15  ;;  %v3298_v20 = vmul.f32 %v2572_v49, %v3158_v16 }
 0x491   : > { %v981_v51 = vpop.xlane.xlu1 %980  ;;  %v983_v4 = vpop.xlane.xlu0 %982  ;;  %v3301_v57 = vmul.f32 %v2574_v50, %v3164_v23  ;;  %v1143_v23 = vpack.c.bf16 %v3128_v46, %v3126_v45  ;;  %v1142_v46 = vpack.c.bf16 %v3122_v42, %v3120_v41 }
 0x492   : > { %2587 = vpow2.f32 %v1024_v44  ;;  %v999_v35 = vsub.f32 %v3258_v59, %v981_v51  ;;  %v1000_v55 = vsub.f32 %v3260_v0, %v983_v4  ;;  %1056 = vadd.xlane.f32.xlu1 %v3298_v20 }
 0x493   : > { %v2576_v58 = vpop.eup %2575  ;;  %2589 = vpow2.f32 %v1026_v10  ;;  %1058 = vadd.xlane.f32.xlu0 %v3301_v57  ;;  %2372 = vmatprep.subr.bf16.mxu0 %v1143_v23 }
 0x494   : > { %v2578_v47 = vpop.eup %2577  ;;  %v1028_v36 = vmul.f32 1.442695, %v999_v35  ;;  %v1030_v16 = vmul.f32 1.442695, %v1000_v55  ;;  %v3308_v1 = vmul.f32 %v2576_v58, %v3173_v40  ;;  %2373 = vmatpush3.bf16.msra.mxu0 %v1143_v23 }
 0x495   : > { %v985_v5 = vpop.xlane.xlu1 %984  ;;  %v3313_v59 = vmul.f32 %v2578_v47, %v3180_v52  ;;  %2374 = vmatprep.subr.bf16.mxu0 %v1142_v46 }
 0x496   : > { %2591 = vpow2.f32 %v1028_v36  ;;  %v1001_v0 = vsub.f32 %v3265_v2, %v985_v5  ;;  %1060 = vadd.xlane.f32.xlu1 %v3308_v1 }
 0x497   : > { %v2580_v6 = vpop.eup %2579  ;;  %2593 = vpow2.f32 %v1030_v16  ;;  %1062 = vadd.xlane.f32.xlu0 %v3313_v59 }
 0x498   : > { %v2582_v40 = vpop.eup %2581  ;;  %v1032_v61 = vmul.f32 1.442695, %v1001_v0  ;;  %v3319_v3 = vmul.f32 %v2580_v6, %v3184_v60  ;;  %2375 = vmatpush3.bf16.msra.mxu0 %v1142_v46 }
 0x499   : > { %v3322_v45 = vmul.f32 %v2582_v40, %v3196_v7  ;;  %v1141_v7 = vpack.c.bf16 %v3116_v38, %v3114_v37 }
 0x49a   : > { %2595 = vpow2.f32 %v1032_v61  ;;  %1064 = vadd.xlane.f32.xlu1 %v3319_v3 }
 0x49b   : > { %v2584_v52 = vpop.eup %2583  ;;  %1066 = vadd.xlane.f32.xlu0 %v3322_v45  ;;  %2376 = vmatprep.subr.bf16.mxu0 %v1141_v7 }
 0x49c   : > { %v2586_v2 = vpop.eup %2585  ;;  %v3329_v9 = vmul.f32 %v2584_v52, %v3205_v17  ;;  %2377 = vmatpush3.bf16.msra.mxu0 %v1141_v7 }
 0x49d   : > { %v3332_v60 = vmul.f32 %v2586_v2, %v3212_v28  ;;  %v1140_v28 = vpack.c.bf16 %v3110_v34, %v3108_v33 }
 0x49e   : > { %1068 = vadd.xlane.f32.xlu1 %v3329_v9 }
 0x49f   : > { %v2588_v41 = vpop.eup %2587  ;;  %1070 = vadd.xlane.f32.xlu0 %v3332_v60  ;;  %2378 = vmatprep.subr.bf16.mxu0 %v1140_v28 }
 0x4a0   : > { %v2590_v42 = vpop.eup %2589  ;;  %v3339_v11 = vmul.f32 %v2588_v41, %v3221_v48  ;;  %2379 = vmatpush3.bf16.msra.mxu0 %v1140_v28 }
 0x4a1   : > { %v3342_v17 = vmul.f32 %v2590_v42, %v3228_v62  ;;  %v1139_v62 = vpack.c.bf16 %v3104_v30, %v3098_v26 }
 0x4a2   : > { %1072 = vadd.xlane.f32.xlu1 %v3339_v11 }
 0x4a3   : > { %v2592_v37 = vpop.eup %2591  ;;  %1074 = vadd.xlane.f32.xlu0 %v3342_v17  ;;  %2380 = vmatprep.subr.bf16.mxu0 %v1139_v62 }
 0x4a4   : > { %v2594_v38 = vpop.eup %2593  ;;  %v3349_v12 = vmul.f32 %v2592_v37, %v3242_v21  ;;  %2381 = vmatpush3.bf16.msra.mxu0 %v1139_v62  ;;  %v1138_v21 = vpack.c.bf16 %v3102_v29, %v3093_v24 }
 0x4a5   : > { %v3352_v48 = vmul.f32 %v2594_v38, %v3244_v25 }
 0x4a6   : > { %1076 = vadd.xlane.f32.xlu1 %v3349_v12  ;;  %2382 = vmatprep.subr.bf16.mxu0 %v1138_v21 }
 0x4a7   : > { %v2596_v33 = vpop.eup %2595  ;;  %1078 = vadd.xlane.f32.xlu0 %v3352_v48 }
 0x4a8   : > { %v3359_v34 = vmul.f32 %v2596_v33, %v3256_v13  ;;  %2383 = vmatpush3.bf16.msra.mxu0 %v1138_v21  ;;  %v1366_v21 = vld [vmem:[#allocation12 + $0x60] sm:$0xff] }
 0x4aa   : > { %1080 = vadd.xlane.f32.xlu1 %v3359_v34 }
 0x513   : > { %v1051_v25 = vpop.xlane.xlu0 %1050 }
 0x514   : > { %2597 = vrcp.f32 %v1051_v25  ;;  %v1367_v25 = vld [vmem:[#allocation12 + $0x68] sm:$0xff] }
 0x517   : > { %v1053_v26 = vpop.xlane.xlu1 %1052 }
 0x518   : > { %2599 = vrcp.f32 %v1053_v26  ;;  %v1055_v30 = vpop.xlane.xlu0 %1054  ;;  %v1365_v26 = vld [vmem:[#allocation12 + $0x58] sm:$0xff] }
 0x519   : > { %2601 = vrcp.f32 %v1055_v30 }
 0x51b   : > { %v1057_v14 = vpop.xlane.xlu1 %1056 }
 0x51c   : > { %2603 = vrcp.f32 %v1057_v14  ;;  %v1059_v19 = vpop.xlane.xlu0 %1058  ;;  %v1363_v14 = vld [vmem:[#allocation12 + $0x48] sm:$0xff] }
 0x51d   : > { %2605 = vrcp.f32 %v1059_v19  ;;  %v1360_v19 = vld [vmem:[#allocation12 + $0x30] sm:$0xff] }
 0x51f   : > { %v1061_v13 = vpop.xlane.xlu1 %1060 }
 0x520   : > { %2607 = vrcp.f32 %v1061_v13  ;;  %v1063_v22 = vpop.xlane.xlu0 %1062  ;;  %v1361_v13 = vld [vmem:[#allocation12 + $0x38] sm:$0xff] }
 0x521   : > { %2609 = vrcp.f32 %v1063_v22  ;;  %v2598_v27 = vpop.eup %2597  ;;  %v1373_v22 = vpack.c.bf16 %v1361_v13, %v1360_v19 }
 0x522   : > { %v1098_v43 = vmul.f32 %v2598_v27, %v3282_v18  ;;  %v1358_v27 = vld [vmem:[#allocation12 + $0x20] sm:$0xff] }
 0x523   : > { %v1065_v24 = vpop.xlane.xlu1 %1064 }
 0x524   : > { %2611 = vrcp.f32 %v1065_v24  ;;  %v1067_v29 = vpop.xlane.xlu0 %1066  ;;  %v1359_v24 = vld [vmem:[#allocation12 + $0x28] sm:$0xff] }
 0x525   : > { %v2600_v31 = vpop.eup %2599  ;;  %2613 = vrcp.f32 %v1067_v29  ;;  %v1372_v29 = vpack.c.bf16 %v1359_v24, %v1358_v27 }
 0x526   : > { %v1099_v56 = vmul.f32 %v2600_v31, %v3288_v53  ;;  %v2602_v32 = vpop.eup %2601  ;;  %v1356_v31 = vld [vmem:[#allocation12 + $0x10] sm:$0xff] }
 0x527   : > { %v1069_v54 = vpop.xlane.xlu1 %1068  ;;  %v1100_v49 = vmul.f32 %v2602_v32, %v3291_v39  ;;  %v1354_v32 = vld [vmem:[#allocation12] sm:$0xff] }
 0x528   : > { %2615 = vrcp.f32 %v1069_v54  ;;  %v1071_v63 = vpop.xlane.xlu0 %1070  ;;  %v1114_v8 = vpack.c.bf16 %v1099_v56, %v1098_v43  ;;  %v1357_v43 = vld [vmem:[#allocation12 + $0x18] sm:$0xff]  ;;  %v1355_v54 = vld [vmem:[#allocation12 + $0x8] sm:$0xff] }
 0x529   : > { %v2604_v15 = vpop.eup %2603  ;;  %2617 = vrcp.f32 %v1071_v63  ;;  %v1371_v56 = vpack.c.bf16 %v1357_v43, %v1356_v31  ;;  %v1370_v63 = vpack.c.bf16 %v1355_v54, %v1354_v32 }
 0x52a   : > { %2384 = vmatprep.mubr.bf16.mxu0 %v1114_v8  ;;  %v1101_v50 = vmul.f32 %v2604_v15, %v3298_v20  ;;  %v2606_v44 = vpop.eup %2605  ;;  %v3383_v8 = vld [vmem:[%s3814_s5] ss:$0 sm:$0xff] }
 0x52b   : > { %v1073_v10 = vpop.xlane.xlu1 %1072  ;;  %v1102_v53 = vmul.f32 %v2606_v44, %v3301_v57 }
 0x52c   : > { %2619 = vrcp.f32 %v1073_v10  ;;  %v1075_v51 = vpop.xlane.xlu0 %1074  ;;  %v1115_v4 = vpack.c.bf16 %v1101_v50, %v1100_v49 }
 0x52d   : > { %v2608_v18 = vpop.eup %2607  ;;  %2621 = vrcp.f32 %v1075_v51 }
 0x52e   : > { %2385 = vmatmul.mubr.bf16.vlgmr.msra.gmra.mxu0 %v1115_v4  ;;  %v1103_v35 = vmul.f32 %v2608_v18, %v3308_v1  ;;  %v2610_v55 = vpop.eup %2609 }
 0x52f   : > { %v1077_v58 = vpop.xlane.xlu1 %1076  ;;  %v1104_v20 = vmul.f32 %v2610_v55, %v3313_v59 }
 0x530   : > { %2623 = vrcp.f32 %v1077_v58  ;;  %v1079_v47 = vpop.xlane.xlu0 %1078  ;;  %v1116_v36 = vpack.c.bf16 %v1103_v35, %v1102_v53 }
 0x531   : > { %v2612_v39 = vpop.eup %2611  ;;  %2625 = vrcp.f32 %v1079_v47 }
 0x532   : > { %2388 = vmatprep.mubr.bf16.mxu0 %v1116_v36  ;;  %v1105_v16 = vmul.f32 %v2612_v39, %v3319_v3  ;;  %v2614_v23 = vpop.eup %2613 }
 0x533   : > { %v1081_v5 = vpop.xlane.xlu1 %1080  ;;  %v1106_v57 = vmul.f32 %v2614_v23, %v3322_v45 }
 0x534   : > { %2627 = vrcp.f32 %v1081_v5  ;;  %v1117_v0 = vpack.c.bf16 %v1105_v16, %v1104_v20 }
 0x535   : > { %v2616_v6 = vpop.eup %2615 }
 0x536   : > { %2389 = vmatmul.mubr.bf16.gmra.mxu0 %v1117_v0  ;;  %v1107_v1 = vmul.f32 %v2616_v6, %v3329_v9  ;;  %v2618_v40 = vpop.eup %2617 }
 0x537   : > { %v1108_v52 = vmul.f32 %v2618_v40, %v3332_v60  ;;  %v1368_v60 = vld [vmem:[#allocation12 + $0x70] sm:$0xff] }
 0x538   : > { %v1118_v61 = vpack.c.bf16 %v1107_v1, %v1106_v57 }
 0x539   : > { %v2620_v46 = vpop.eup %2619 }
 0x53a   : > { %2392 = vmatprep.mubr.bf16.mxu0 %v1118_v61  ;;  %v1109_v59 = vmul.f32 %v2620_v46, %v3339_v11  ;;  %v2622_v2 = vpop.eup %2621  ;;  %v1369_v11 = vld [vmem:[#allocation12 + $0x78] sm:$0xff] }
 0x53b   : > { %v1110_v41 = vmul.f32 %v2622_v2, %v3342_v17  ;;  %v1377_v33 = vpack.c.bf16 %v1369_v11, %v1368_v60  ;;  %v1376_v17 = vpack.c.bf16 %v1367_v25, %v1366_v21 }
 0x53c   : > { %v1119_v3 = vpack.c.bf16 %v1109_v59, %v1108_v52 }
 0x53d   : > { %v2624_v7 = vpop.eup %2623  ;;  %2400 = vmatprep.subr.bf16.mxu1 %v1377_v33 }
 0x53e   : > { %2393 = vmatmul.mubr.bf16.gmra.mxu0 %v1119_v3  ;;  %v1111_v42 = vmul.f32 %v2624_v7, %v3349_v12  ;;  %v2626_v28 = vpop.eup %2625  ;;  %2401 = vmatpush3.bf16.msra.mxu1 %v1377_v33  ;;  %v1364_v12 = vld [vmem:[#allocation12 + $0x50] sm:$0xff] }
 0x53f   : > { %v1112_v9 = vmul.f32 %v2626_v28, %v3352_v48  ;;  %2402 = vmatprep.subr.bf16.mxu1 %v1376_v17  ;;  %v1375_v30 = vpack.c.bf16 %v1365_v26, %v1364_v12  ;;  %v1362_v48 = vld [vmem:[#allocation12 + $0x40] sm:$0xff] }
 0x540   : > { %v1120_v45 = vpack.c.bf16 %v1111_v42, %v1110_v41 }
 0x541   : > { %v2628_v37 = vpop.eup %2627 }
 0x542   : > { %2396 = vmatprep.mubr.bf16.mxu0 %v1120_v45  ;;  %v1113_v38 = vmul.f32 %v2628_v37, %v3359_v34  ;;  %2403 = vmatpush3.bf16.msra.mxu1 %v1376_v17  ;;  %v1374_v34 = vpack.c.bf16 %v1363_v14, %v1362_v48 }
 0x543   : > { %2404 = vmatprep.subr.bf16.mxu1 %v1375_v30 }
 0x544   : > { %v1121_v62 = vpack.c.bf16 %v1113_v38, %v1112_v9 }
 0x546   : > { %2397 = vmatmul.mubr.bf16.gmra.mxu0 %v1121_v62  ;;  %2405 = vmatpush3.bf16.msra.mxu1 %v1375_v30 }
 0x547   : > { %2406 = vmatprep.subr.bf16.mxu1 %v1374_v34 }
 0x54a   : > { %2407 = vmatpush3.bf16.msra.mxu1 %v1374_v34 }
 0x54b   : > { %2408 = vmatprep.subr.bf16.mxu1 %v1373_v22 }
 0x54e   : > { %2409 = vmatpush3.bf16.msra.mxu1 %v1373_v22 }
 0x54f   : > { %2410 = vmatprep.subr.bf16.mxu1 %v1372_v29 }
 0x552   : > { %2411 = vmatpush3.bf16.msra.mxu1 %v1372_v29 }
 0x553   : > { %2412 = vmatprep.subr.bf16.mxu1 %v1371_v56 }
 0x556   : > { %2413 = vmatpush3.bf16.msra.mxu1 %v1371_v56 }
 0x557   : > { %2414 = vmatprep.subr.bf16.mxu1 %v1370_v63 }
 0x55a   : > { %2415 = vmatpush3.bf16.msra.mxu1 %v1370_v63 }
 0x5ee   : > { %v2386_v15 = vpop.f32.mrf.mxu0 }
 0x5ef   : > { %v3386_v49 = vadd.f32 %v2386_v15, %v3383_v8 }
 0x5f0   : > { %v1187_v50 = vpop.f32.mrf.mxu0 }
 0x5f1   : > { %v1268_v44 = vmin.f32 %v3386_v49, 0.0  ;;  %v3390_v10 = vadd.f32 %v3383_v8, %v1187_v50  ;;  %vm1252_vm5 = vcmp.gt.f32.partialorder %v3386_v49, 0.0 }
 0x5f2   : > { %v2387_v51 = vpop.f32.mrf.mxu0 }
 0x5f3   : > { %v1286_v4 = vmul.f32 1.442695, %v1268_v44  ;;  %v1266_v18 = vmin.f32 %v3390_v10, 0.0  ;;  %v3394_v53 = vadd.f32 %v2387_v51, %v3383_v8  ;;  %vm1250_vm4 = vcmp.gt.f32.partialorder %v3390_v10, 0.0 }
 0x5f4   : > { %v1190_v35 = vpop.f32.mrf.mxu0 }
 0x5f5   : > { %v1282_v55 = vmul.f32 1.442695, %v1266_v18  ;;  %v1269_v58 = vmin.f32 %v3394_v53, 0.0  ;;  %v3398_v47 = vadd.f32 %v3383_v8, %v1190_v35  ;;  %2629 = vpow2.f32 %v1286_v4 }
 0x5f6   : > { %v2390_v36 = vpop.f32.mrf.mxu0  ;;  %vm1253_vm2 = vcmp.gt.f32.partialorder %v3394_v53, 0.0 }
 0x5f7   : > { %v1288_v39 = vmul.f32 1.442695, %v1269_v58  ;;  %v3401_v20 = vadd.f32 %v2390_v36, %v3383_v8  ;;  %2631 = vpow2.f32 %v1282_v55  ;;  %v1267_v16 = vmin.f32 %v3398_v47, 0.0 }
 0x5f8   : > { %v1203_v23 = vpop.f32.mrf.mxu0  ;;  %vm1251_vm3 = vcmp.gt.f32.partialorder %v3398_v47, 0.0 }
 0x5f9   : > { %2633 = vpow2.f32 %v1288_v39  ;;  %v3405_v5 = vadd.f32 %v3383_v8, %v1203_v23  ;;  %v1284_v0 = vmul.f32 1.442695, %v1267_v16  ;;  %v1272_v6 = vmin.f32 %v3401_v20, 0.0 }
 0x5fa   : > { %v2391_v57 = vpop.f32.mrf.mxu0  ;;  %vm1256_vm9 = vcmp.gt.f32.partialorder %v3401_v20, 0.0 }
 0x5fb   : > { %v1270_v1 = vmin.f32 %v3405_v5, 0.0  ;;  %v3410_v40 = vadd.f32 %v2391_v57, %v3383_v8  ;;  %2635 = vpow2.f32 %v1284_v0  ;;  %v1294_v59 = vmul.f32 1.442695, %v1272_v6 }
 0x5fc   : > { %v1206_v61 = vpop.f32.mrf.mxu0  ;;  %vm1254_vm6 = vcmp.gt.f32.partialorder %v3405_v5, 0.0 }
 0x5fd   : > { %v1290_v46 = vmul.f32 1.442695, %v1270_v1  ;;  %v1273_v52 = vmin.f32 %v3410_v40, 0.0  ;;  %v3414_v2 = vadd.f32 %v3383_v8, %v1206_v61  ;;  %vm1257_vm7 = vcmp.gt.f32.partialorder %v3410_v40, 0.0 }
 0x5fe   : > { %v2394_v3 = vpop.f32.mrf.mxu0 }
 0x5ff   : > { %v1296_v7 = vmul.f32 1.442695, %v1273_v52  ;;  %v3417_v41 = vadd.f32 %v2394_v3, %v3383_v8  ;;  %2637 = vpow2.f32 %v1290_v46  ;;  %v1271_v42 = vmin.f32 %v3414_v2, 0.0 }
 0x600   : > { %v1219_v28 = vpop.f32.mrf.mxu0  ;;  %vm1255_vm8 = vcmp.gt.f32.partialorder %v3414_v2, 0.0 }
 0x601   : > { %2639 = vpow2.f32 %v1296_v7  ;;  %v3421_v45 = vadd.f32 %v3383_v8, %v1219_v28  ;;  %v1292_v37 = vmul.f32 1.442695, %v1271_v42  ;;  %v1276_v9 = vmin.f32 %v3417_v41, 0.0 }
 0x602   : > { %2641 = vpow2.f32 %v1294_v59  ;;  %v2395_v38 = vpop.f32.mrf.mxu0  ;;  %v2630_v11 = vpop.eup %2629  ;;  %vm1260_vm13 = vcmp.gt.f32.partialorder %v3417_v41, 0.0 }
 0x603   : > { %v1274_v62 = vmin.f32 %v3421_v45, 0.0  ;;  %v3426_v60 = vadd.f32 %v2395_v38, %v3383_v8  ;;  %2643 = vpow2.f32 %v1292_v37  ;;  %v1302_v26 = vmul.f32 1.442695, %v1276_v9 }
 0x604   : > { %v1222_v33 = vpop.f32.mrf.mxu0  ;;  %v2632_v21 = vpop.eup %2631  ;;  %v2144_v31 = vadd.f32 -1.0, %v2630_v11  ;;  %vm1258_vm10 = vcmp.gt.f32.partialorder %v3421_v45, 0.0 }
 0x605   : > { %v1298_v25 = vmul.f32 1.442695, %v1274_v62  ;;  %v1277_v17 = vmin.f32 %v3426_v60, 0.0  ;;  %v3430_v30 = vadd.f32 %v3383_v8, %v1222_v33  ;;  %v2142_v29 = vadd.f32 -1.0, %v2632_v21 }
 0x606   : > { %v2634_v12 = vpop.eup %2633  ;;  %v2398_v48 = vpop.f32.mrf.mxu0  ;;  %v1332_v23 = vsel %vm1252_vm5, %v3386_v49, %v2144_v31  ;;  %vm1261_vm11 = vcmp.gt.f32.partialorder %v3426_v60, 0.0 }
 0x607   : > { %v1304_v14 = vmul.f32 1.442695, %v1277_v17  ;;  %v3433_v34 = vadd.f32 %v2398_v48, %v3383_v8  ;;  %2645 = vpow2.f32 %v1298_v25  ;;  %v1275_v19 = vmin.f32 %v3430_v30, 0.0 }
 0x608   : > { %v1235_v13 = vpop.f32.mrf.mxu0  ;;  %v2145_v22 = vadd.f32 -1.0, %v2634_v12  ;;  %v2636_v27 = vpop.eup %2635  ;;  %v1330_v55 = vsel %vm1250_vm4, %v3390_v10, %v2142_v29  ;;  %vm1259_vm12 = vcmp.gt.f32.partialorder %v3430_v30, 0.0 }
 0x609   : > { %2647 = vpow2.f32 %v1304_v14  ;;  %v3437_v24 = vadd.f32 %v3383_v8, %v1235_v13  ;;  %v1300_v43 = vmul.f32 1.442695, %v1275_v19  ;;  %v1280_v56 = vmin.f32 %v3433_v34, 0.0 }
 0x60a   : > { %2649 = vpow2.f32 %v1302_v26  ;;  %v2399_v32 = vpop.f32.mrf.mxu0  ;;  %v2143_v54 = vadd.f32 -1.0, %v2636_v27  ;;  %v1333_v51 = vsel %vm1253_vm2, %v3394_v53, %v2145_v22  ;;  %vm1264_vm1 = vcmp.gt.f32.partialorder %v3433_v34, 0.0 }
 0x60b   : > { %v1278_v63 = vmin.f32 %v3437_v24, 0.0  ;;  %v3443_v15 = vadd.f32 %v2399_v32, %v3383_v8  ;;  %2651 = vpow2.f32 %v1300_v43  ;;  %v1310_v36 = vmul.f32 1.442695, %v1280_v56 }
 0x60c   : > { %v1238_v50 = vpop.f32.mrf.mxu0  ;;  %v1331_v44 = vsel %vm1251_vm3, %v3398_v47, %v2143_v54  ;;  %v2638_v4 = vpop.eup %2637  ;;  %v1347_v6 = vpack.c.bf16 %v1333_v51, %v1332_v23  ;;  %vm1262_vm14 = vcmp.gt.f32.partialorder %v3437_v24, 0.0 }
 0x60d   : > { %v1306_v18 = vmul.f32 1.442695, %v1278_v63  ;;  %v1281_v35 = vmin.f32 %v3443_v15, 0.0  ;;  %v3453_v39 = vadd.f32 %v3383_v8, %v1238_v50  ;;  %v1346_v16 = vpack.c.bf16 %v1331_v44, %v1330_v55 }
 0x60e   : > { %v2640_v58 = vpop.eup %2639  ;;  %v2146_v57 = vadd.f32 -1.0, %v2638_v4  ;;  %vm1265_vm15 = vcmp.gt.f32.partialorder %v3443_v15, 0.0 }
 0x60f   : > { %v2642_v0 = vpop.eup %2641  ;;  %v1312_v47 = vmul.f32 1.442695, %v1281_v35  ;;  %2653 = vpow2.f32 %v1306_v18  ;;  %v1279_v53 = vmin.f32 %v3453_v39, 0.0  ;;  %2416 = vmatprep.mubr.bf16.mxu1 %v1346_v16  ;;  %v2149_v1 = vadd.f32 -1.0, %v2640_v58 }
 0x610   : > { %v2644_v61 = vpop.eup %2643  ;;  %2417 = vmatmul.mubr.bf16.vlgmr.msra.gmra.mxu1 %v1347_v6  ;;  %v2148_v8 = vadd.f32 -1.0, %v2642_v0  ;;  %v1334_v49 = vsel %vm1254_vm6, %v3405_v5, %v2146_v57  ;;  %vm1263_vm0 = vcmp.gt.f32.partialorder %v3453_v39, 0.0 }
 0x611   : > { %2655 = vpow2.f32 %v1312_v47  ;;  %v1308_v10 = vmul.f32 1.442695, %v1279_v53  ;;  %v2147_v46 = vadd.f32 -1.0, %v2644_v61  ;;  %v1337_v59 = vsel %vm1257_vm7, %v3410_v40, %v2149_v1 }
 0x612   : > { %2657 = vpow2.f32 %v1310_v36  ;;  %v1336_v28 = vsel %vm1256_vm9, %v3401_v20, %v2148_v8 }
 0x613   : > { %2659 = vpow2.f32 %v1308_v10  ;;  %v1335_v52 = vsel %vm1255_vm8, %v3414_v2, %v2147_v46  ;;  %v1349_v9 = vpack.c.bf16 %v1337_v59, %v1336_v28 }
 0x614   : > { %v2646_v3 = vpop.eup %2645  ;;  %v1348_v7 = vpack.c.bf16 %v1335_v52, %v1334_v49 }
 0x615   : > { %v2150_v38 = vadd.f32 -1.0, %v2646_v3 }
 0x616   : > { %v2648_v42 = vpop.eup %2647  ;;  %2420 = vmatprep.mubr.bf16.mxu1 %v1348_v7 }
 0x617   : > { %v2650_v37 = vpop.eup %2649  ;;  %v2153_v62 = vadd.f32 -1.0, %v2648_v42  ;;  %v1338_v40 = vsel %vm1258_vm10, %v3421_v45, %v2150_v38 }
 0x618   : > { %v2652_v11 = vpop.eup %2651  ;;  %2421 = vmatmul.mubr.bf16.gmra.mxu1 %v1349_v9  ;;  %v2152_v5 = vadd.f32 -1.0, %v2650_v37 }
 0x619   : > { %v2151_v33 = vadd.f32 -1.0, %v2652_v11  ;;  %v1341_v20 = vsel %vm1261_vm11, %v3426_v60, %v2153_v62 }
 0x61a   : > { %v1340_v12 = vsel %vm1260_vm13, %v3417_v41, %v2152_v5 }
 0x61b   : > { %v1339_v2 = vsel %vm1259_vm12, %v3430_v30, %v2151_v33  ;;  %v1351_v48 = vpack.c.bf16 %v1341_v20, %v1340_v12 }
 0x61c   : > { %v2654_v21 = vpop.eup %2653  ;;  %v1350_v25 = vpack.c.bf16 %v1339_v2, %v1338_v40 }
 0x61d   : > { %v2154_v14 = vadd.f32 -1.0, %v2654_v21 }
 0x61e   : > { %v2656_v17 = vpop.eup %2655  ;;  %2424 = vmatprep.mubr.bf16.mxu1 %v1350_v25 }
 0x61f   : > { %v2658_v26 = vpop.eup %2657  ;;  %v2157_v19 = vadd.f32 -1.0, %v2656_v17  ;;  %v1342_v60 = vsel %vm1262_vm14, %v3437_v24, %v2154_v14 }
 0x620   : > { %v2660_v13 = vpop.eup %2659  ;;  %2425 = vmatmul.mubr.bf16.gmra.mxu1 %v1351_v48  ;;  %v2156_v45 = vadd.f32 -1.0, %v2658_v26 }
 0x621   : > { %v2155_v22 = vadd.f32 -1.0, %v2660_v13  ;;  %v1345_v41 = vsel %vm1265_vm15, %v3443_v15, %v2157_v19 }
 0x622   : > { %v1344_v29 = vsel %vm1264_vm1, %v3433_v34, %v2156_v45 }
 0x623   : > { %v1343_v30 = vsel %vm1263_vm0, %v3453_v39, %v2155_v22  ;;  %v1353_v31 = vpack.c.bf16 %v1345_v41, %v1344_v29 }
 0x624   : > { %v1352_v27 = vpack.c.bf16 %v1343_v30, %v1342_v60 }
 0x626   : > { %2428 = vmatprep.mubr.bf16.mxu1 %v1352_v27 }
 0x628   : > { %2429 = vmatmul.mubr.bf16.gmra.mxu1 %v1353_v31 }
 0x6d0   : > { %v2418_v43 = vpop.f32.mrf.mxu1 }
 0x6d1   : > { %1478 = vst [vmem:[#allocation3 + $0x10] sm:$0xff] %v2418_v43 }
 0x6d2   : > { %v1412_v56 = vpop.f32.mrf.mxu1 }
 0x6d3   : > { %1476 = vst [vmem:[#allocation3 + $0x28] sm:$0xff] %v1412_v56 }
 0x6d4   : > { %v2419_v32 = vpop.f32.mrf.mxu1 }
 0x6d5   : > { %1479 = vst [vmem:[#allocation3 + $0x40] sm:$0xff] %v2419_v32 }
 0x6d6   : > { %v1415_v54 = vpop.f32.mrf.mxu1 }
 0x6d7   : > { %1477 = vst [vmem:[#allocation3 + $0x68] sm:$0xff] %v1415_v54 }
 0x6d8   : > { %v2422_v24 = vpop.f32.mrf.mxu1 }
 0x6d9   : > { %1482 = vst [vmem:[#allocation3 + $0x70] sm:$0xff] %v2422_v24 }
 0x6da   : > { %v1428_v63 = vpop.f32.mrf.mxu1 }
 0x6db   : > { %1480 = vst [vmem:[#allocation3 + $0x48] sm:$0xff] %v1428_v63 }
 0x6dc   : > { %v2423_v15 = vpop.f32.mrf.mxu1 }
 0x6dd   : > { %1483 = vst [vmem:[#allocation3 + $0x38] sm:$0xff] %v2423_v15 }
 0x6de   : > { %v1431_v50 = vpop.f32.mrf.mxu1 }
 0x6df   : > { %1481 = vst [vmem:[#allocation3 + $0x30] sm:$0xff] %v1431_v50 }
 0x6e0   : > { %v2426_v34 = vpop.f32.mrf.mxu1 }
 0x6e1   : > { %1486 = vst [vmem:[#allocation3 + $0x18] sm:$0xff] %v2426_v34 }
 0x6e2   : > { %v1444_v44 = vpop.f32.mrf.mxu1 }
 0x6e3   : > { %1484 = vst [vmem:[#allocation3 + $0x20] sm:$0xff] %v1444_v44 }
 0x6e4   : > { %v2427_v51 = vpop.f32.mrf.mxu1 }
 0x6e5   : > { %1487 = vst [vmem:[#allocation3 + $0x58] sm:$0xff] %v2427_v51 }
 0x6e6   : > { %v1447_v4 = vpop.f32.mrf.mxu1 }
 0x6e7   : > { %1485 = vst [vmem:[#allocation3 + $0x78] sm:$0xff] %v1447_v4 }
 0x6e8   : > { %v2430_v18 = vpop.f32.mrf.mxu1 }
 0x6e9   : > { %1490 = vst [vmem:[#allocation3 + $0x60] sm:$0xff] %v2430_v18 }
 0x6ea   : > { %v1460_v35 = vpop.f32.mrf.mxu1 }
 0x6eb   : > { %1488 = vst [vmem:[#allocation3] sm:$0xff] %v1460_v35 }
 0x6ec   : > { %v2431_v55 = vpop.f32.mrf.mxu1 }
 0x6ed   : > { %1491 = vst [vmem:[#allocation3 + $0x50] sm:$0xff] %v2431_v55 }
 0x6ee   : > { %v1463_v58 = vpop.f32.mrf.mxu1 }
 0x6ef   : > { %1489 = vst [vmem:[#allocation3 + $0x8] sm:$0xff] %v1463_v58 }
 0x6f0 PF: > { %p2158_p7 = scmp.ne.s32.totalorder %s2883_s13, 1 }
 0x6f2   : > { %1494 = sbr.rel (%p2158_p7) target bundleno = 2479 (0x9af), region = 92 }
 0x6f7   : > { %v3482_v36 = vld [vmem:[#allocation3 + $0x28] sm:$0xff]  ;;  %v2159_v39 = vld [vmem:[%s3817_s8] ss:$0 sm:$0xff]  ;;  %v3493_v6 = vld [vmem:[#allocation3 + $0x78] sm:$0xff] }
 0x6f8   : > { %v3487_v16 = vld [vmem:[#allocation3 + $0x20] sm:$0xff]  ;;  %v1519_v23 = vmul.f32 %v2159_v39, %v3482_v36  ;;  %v3491_v47 = vld [vmem:[#allocation3 + $0x68] sm:$0xff]  ;;  %v1528_v57 = vmul.f32 %v2159_v39, %v3493_v6  ;;  %v3497_v1 = vld [vmem:[#allocation3 + $0x10] sm:$0xff] }
 0x6f9   : > { %v1527_v0 = vmul.f32 %v2159_v39, %v3487_v16  ;;  %v1520_v53 = vmul.f32 %v2159_v39, %v3491_v47  ;;  %v3499_v61 = vld [vmem:[#allocation3 + $0x40] sm:$0xff]  ;;  %v1521_v10 = vmul.f32 %v2159_v39, %v3497_v1  ;;  %v3503_v8 = vld [vmem:[#allocation3 + $0x18] sm:$0xff]  ;;  %v3509_v3 = vld [vmem:[#allocation3 + $0x48] sm:$0xff] }
 0x6fa   : > { %1535 = vadd.xlane.f32.xlu0 %v1519_v23  ;;  %v1522_v46 = vmul.f32 %v2159_v39, %v3499_v61  ;;  %v3505_v49 = vld [vmem:[#allocation3 + $0x58] sm:$0xff]  ;;  %v1529_v52 = vmul.f32 %v2159_v39, %v3503_v8  ;;  %v3511_v7 = vld [vmem:[#allocation3 + $0x30] sm:$0xff]  ;;  %v1523_v42 = vmul.f32 %v2159_v39, %v3509_v3  ;;  %v3515_v37 = vld [vmem:[#allocation3] sm:$0xff] }
 0x6fb   : > { %1551 = vadd.xlane.f32.xlu1 %v1527_v0  ;;  %v1530_v59 = vmul.f32 %v2159_v39, %v3505_v49  ;;  %v1524_v28 = vmul.f32 %v2159_v39, %v3511_v7  ;;  %v3517_v9 = vld [vmem:[#allocation3 + $0x8] sm:$0xff]  ;;  %v1531_v38 = vmul.f32 %v2159_v39, %v3515_v37  ;;  %v3521_v11 = vld [vmem:[#allocation3 + $0x70] sm:$0xff]  ;;  %v3523_v33 = vld [vmem:[#allocation3 + $0x38] sm:$0xff] }
 0x6fc   : > { %v1532_v62 = vmul.f32 %v2159_v39, %v3517_v9  ;;  %v1525_v5 = vmul.f32 %v2159_v39, %v3521_v11  ;;  %v1526_v40 = vmul.f32 %v2159_v39, %v3523_v33  ;;  %v3527_v2 = vld [vmem:[#allocation3 + $0x60] sm:$0xff]  ;;  %v3529_v20 = vld [vmem:[#allocation3 + $0x50] sm:$0xff] }
 0x6fd   : > { %v1533_v21 = vmul.f32 %v2159_v39, %v3527_v2  ;;  %v1534_v25 = vmul.f32 %v2159_v39, %v3529_v20  ;;  %v1567_v17 = vld [vmem:[#allocation9] sm:$0xff]  ;;  %v1569_v12 = vld [vmem:[#allocation9 + $0x10] sm:$0xff]  ;;  %v3533_v48 = vld [vmem:[#allocation5] ss:$0 sm:$0xff] }
 0x6fe   : > { %1537 = vadd.xlane.f32.xlu0 %v1520_v53  ;;  %v1571_v26 = vunpack.c.0.s8 %v1567_v17  ;;  %v1579_v14 = vunpack.c.0.s8 %v1569_v12  ;;  %v1572_v45 = vunpack.c.1.s8 %v1567_v17  ;;  %v1580_v27 = vunpack.c.1.s8 %v1569_v12 }
 0x6ff   : > { %1553 = vadd.xlane.f32.xlu1 %v1528_v57  ;;  %v1573_v54 = vunpack.c.2.s8 %v1567_v17  ;;  %v1574_v44 = vunpack.c.3.s8 %v1567_v17  ;;  %v1581_v39 = vunpack.c.2.s8 %v1569_v12  ;;  %v1582_v57 = vunpack.c.3.s8 %v1569_v12 }
 0x700   : > { %v3535_v22 = vcvt.s32.f32 %v1571_v26  ;;  %v3539_v41 = vcvt.s32.f32 %v1579_v14  ;;  %v3542_v32 = vcvt.s32.f32 %v1572_v45  ;;  %v3547_v34 = vcvt.s32.f32 %v1580_v27  ;;  %v3578_v14 = vld [vmem:[#allocation9 + $0x18] sm:$0xff] }
 0x701   : > { %v3553_v58 = vcvt.s32.f32 %v1573_v54  ;;  %v3576_v26 = vcvt.s32.f32 %v1582_v57 }
 0x702   : > { %1539 = vadd.xlane.f32.xlu0 %v1521_v10  ;;  %vm1658_vm2 = vcmp.gt.f32.partialorder %v3535_v22, 0.0  ;;  %vm1666_vm3 = vcmp.gt.f32.partialorder %v3539_v41, 0.0  ;;  %vm1659_vm4 = vcmp.gt.f32.partialorder %v3542_v32, 0.0  ;;  %v3557_v10 = vld [vmem:[#allocation9 + $0x8] sm:$0xff]  ;;  %vm1667_vm5 = vcmp.gt.f32.partialorder %v3547_v34, 0.0 }
 0x703   : > { %1541 = vadd.xlane.f32.xlu1 %v1522_v46  ;;  %vm1660_vm6 = vcmp.gt.f32.partialorder %v3553_v58, 0.0  ;;  %v1576_v45 = vunpack.c.1.s8 %v3557_v10  ;;  %vm1669_vm9 = vcmp.gt.f32.partialorder %v3576_v26, 0.0 }
 0x706   : > { %1555 = vadd.xlane.f32.xlu0 %v1529_v52 }
 0x707   : > { %1557 = vadd.xlane.f32.xlu1 %v1530_v59  ;;  %v3564_v59 = vcvt.s32.f32 %v1574_v44  ;;  %v3601_v44 = vcvt.s32.f32 %v1576_v45 }
 0x709   : > { %vm1661_vm7 = vcmp.gt.f32.partialorder %v3564_v59, 0.0  ;;  %vm1663_vm11 = vcmp.gt.f32.partialorder %v3601_v44, 0.0 }
 0x70a   : > { %1543 = vadd.xlane.f32.xlu0 %v1523_v42 }
 0x70b   : > { %1545 = vadd.xlane.f32.xlu1 %v1524_v28 }
 0x70e   : > { %1559 = vadd.xlane.f32.xlu0 %v1531_v38 }
 0x70f   : > { %1561 = vadd.xlane.f32.xlu1 %v1532_v62 }
 0x712   : > { %1547 = vadd.xlane.f32.xlu0 %v1525_v5 }
 0x713   : > { %1549 = vadd.xlane.f32.xlu1 %v1526_v40  ;;  %v3571_v40 = vcvt.s32.f32 %v1581_v39 }
 0x715   : > { %vm1668_vm8 = vcmp.gt.f32.partialorder %v3571_v40, 0.0 }
 0x716   : > { %1563 = vadd.xlane.f32.xlu0 %v1533_v21  ;;  %v1575_v21 = vunpack.c.0.s8 %v3557_v10 }
 0x717   : > { %1565 = vadd.xlane.f32.xlu1 %v1534_v25 }
 0x783   : > { %v1536_v19 = vpop.xlane.xlu0 %1535 }
 0x784   : > { %v1552_v13 = vpop.xlane.xlu1 %1551  ;;  %v1610_v60 = vadd.f32 %v3533_v48, %v1536_v19 }
 0x785   : > { %v1618_v30 = vadd.f32 %v3533_v48, %v1552_v13 }
 0x786   : > { %v1626_v29 = vmul.f32 0.2, %v1610_v60 }
 0x787   : > { %v1634_v31 = vmul.f32 0.2, %v1618_v30  ;;  %v1538_v43 = vpop.xlane.xlu0 %1537 }
 0x788   : > { %v1554_v56 = vpop.xlane.xlu1 %1553  ;;  %v1611_v24 = vadd.f32 %v3533_v48, %v1538_v43  ;;  %v1642_v15 = vmax.f32 %v1610_v60, %v1626_v29  ;;  %v3591_v43 = vcvt.s32.f32 %v1575_v21 }
 0x789   : > { %v1619_v63 = vadd.f32 %v3533_v48, %v1554_v56  ;;  %v1650_v50 = vmax.f32 %v1618_v30, %v1634_v31  ;;  %v1583_v56 = vunpack.c.0.s8 %v3578_v14 }
 0x78a   : > { %v1627_v51 = vmul.f32 0.2, %v1611_v24  ;;  %v3549_v18 = vsel %vm1658_vm2, %v1642_v15, -1e+30  ;;  %vm1662_vm10 = vcmp.gt.f32.partialorder %v3591_v43, 0.0 }
 0x78b   : > { %v1635_v4 = vmul.f32 0.2, %v1619_v63  ;;  %1690 = vmax.xlane.f32.xlu0 %v3549_v18  ;;  %v1540_v35 = vpop.xlane.xlu0 %1539  ;;  %v3561_v46 = vsel %vm1666_vm3, %v1650_v50, -1e+30 }
 0x78c   : > { %v1542_v55 = vpop.xlane.xlu1 %1541  ;;  %v1612_v23 = vadd.f32 %v3533_v48, %v1540_v35  ;;  %v1643_v53 = vmax.f32 %v1611_v24, %v1627_v51  ;;  %v1584_v51 = vunpack.c.1.s8 %v3578_v14 }
 0x78d   : > { %v1613_v0 = vadd.f32 %v3533_v48, %v1542_v55  ;;  %v1651_v52 = vmax.f32 %v1619_v63, %v1635_v4 }
 0x78e   : > { %v1628_v42 = vmul.f32 0.2, %v1612_v23  ;;  %v3566_v38 = vsel %vm1659_vm4, %v1643_v53, -1e+30  ;;  %v1577_v53 = vunpack.c.2.s8 %v3557_v10 }
 0x78f   : > { %v1629_v28 = vmul.f32 0.2, %v1613_v0  ;;  %1706 = vmax.xlane.f32.xlu0 %v3561_v46  ;;  %1692 = vmax.xlane.f32.xlu1 %v3566_v38  ;;  %v1556_v62 = vpop.xlane.xlu0 %1555  ;;  %v3582_v19 = vsel %vm1667_vm5, %v1651_v52, -1e+30 }
 0x790   : > { %v1558_v5 = vpop.xlane.xlu1 %1557  ;;  %v1620_v25 = vadd.f32 %v3533_v48, %v1556_v62  ;;  %v1644_v12 = vmax.f32 %v1612_v23, %v1628_v42  ;;  %v3626_v45 = vcvt.s32.f32 %v1577_v53 }
 0x791   : > { %v1621_v17 = vadd.f32 %v3533_v48, %v1558_v5  ;;  %v1645_v13 = vmax.f32 %v1613_v0, %v1629_v28  ;;  %v3609_v0 = vcvt.s32.f32 %v1583_v56  ;;  %v3619_v5 = vcvt.s32.f32 %v1584_v51 }
 0x792   : > { %v1636_v60 = vmul.f32 0.2, %v1620_v25  ;;  %v3586_v27 = vsel %vm1660_vm6, %v1644_v12, -1e+30  ;;  %vm1664_vm14 = vcmp.gt.f32.partialorder %v3626_v45, 0.0 }
 0x793   : > { %v1637_v30 = vmul.f32 0.2, %v1621_v17  ;;  %1708 = vmax.xlane.f32.xlu1 %v3582_v19  ;;  %1694 = vmax.xlane.f32.xlu0 %v3586_v27  ;;  %v1544_v29 = vpop.xlane.xlu0 %1543  ;;  %v3599_v15 = vsel %vm1661_vm7, %v1645_v13, -1e+30  ;;  %vm1670_vm12 = vcmp.gt.f32.partialorder %v3609_v0, 0.0  ;;  %vm1671_vm13 = vcmp.gt.f32.partialorder %v3619_v5, 0.0 }
 0x794   : > { %v1546_v31 = vpop.xlane.xlu1 %1545  ;;  %v1614_v54 = vadd.f32 %v3533_v48, %v1544_v29  ;;  %v1652_v63 = vmax.f32 %v1620_v25, %v1636_v60  ;;  %v1578_v60 = vunpack.c.3.s8 %v3557_v10 }
 0x795   : > { %v1615_v24 = vadd.f32 %v3533_v48, %v1546_v31  ;;  %v1653_v50 = vmax.f32 %v1621_v17, %v1637_v30  ;;  %v1585_v30 = vunpack.c.2.s8 %v3578_v14 }
 0x796   : > { %v1630_v4 = vmul.f32 0.2, %v1614_v54  ;;  %v3604_v55 = vsel %vm1668_vm8, %v1652_v63, -1e+30 }
 0x797   : > { %v1631_v35 = vmul.f32 0.2, %v1615_v24  ;;  %1696 = vmax.xlane.f32.xlu1 %v3599_v15  ;;  %1710 = vmax.xlane.f32.xlu0 %v3604_v55  ;;  %v1560_v39 = vpop.xlane.xlu0 %1559  ;;  %v3616_v28 = vsel %vm1669_vm9, %v1653_v50, -1e+30 }
 0x798   : > { %v1562_v23 = vpop.xlane.xlu1 %1561  ;;  %v1622_v57 = vadd.f32 %v3533_v48, %v1560_v39  ;;  %v1646_v42 = vmax.f32 %v1614_v54, %v1630_v4  ;;  %v3644_v39 = vcvt.s32.f32 %v1585_v30 }
 0x799   : > { %v1623_v52 = vadd.f32 %v3533_v48, %v1562_v23  ;;  %v1647_v62 = vmax.f32 %v1615_v24, %v1631_v35  ;;  %v3642_v35 = vcvt.s32.f32 %v1578_v60  ;;  %v1586_v23 = vunpack.c.3.s8 %v3578_v14 }
 0x79a   : > { %v1638_v21 = vmul.f32 0.2, %v1622_v57  ;;  %v3621_v17 = vsel %vm1662_vm10, %v1646_v42, -1e+30  ;;  %vm1672_vm0 = vcmp.gt.f32.partialorder %v3644_v39, 0.0 }
 0x79b   : > { %v1639_v25 = vmul.f32 0.2, %v1623_v52  ;;  %1712 = vmax.xlane.f32.xlu1 %v3616_v28  ;;  %1698 = vmax.xlane.f32.xlu0 %v3621_v17  ;;  %v1548_v12 = vpop.xlane.xlu0 %1547  ;;  %v3634_v54 = vsel %vm1663_vm11, %v1647_v62, -1e+30  ;;  %vm1665_vm15 = vcmp.gt.f32.partialorder %v3642_v35, 0.0  ;;  %v3657_v14 = vcvt.s32.f32 %v1586_v23 }
 0x79c   : > { %v1550_v13 = vpop.xlane.xlu1 %1549  ;;  %v1616_v29 = vadd.f32 %v3533_v48, %v1548_v12  ;;  %v1654_v56 = vmax.f32 %v1622_v57, %v1638_v21 }
 0x79d   : > { %v1617_v31 = vadd.f32 %v3533_v48, %v1550_v13  ;;  %v1655_v24 = vmax.f32 %v1623_v52, %v1639_v25  ;;  %vm1673_vm1 = vcmp.gt.f32.partialorder %v3657_v14, 0.0 }
 0x79e   : > { %v1632_v63 = vmul.f32 0.2, %v1616_v29  ;;  %v3637_v51 = vsel %vm1670_vm12, %v1654_v56, -1e+30 }
 0x79f   : > { %v1633_v50 = vmul.f32 0.2, %v1617_v31  ;;  %1700 = vmax.xlane.f32.xlu1 %v3634_v54  ;;  %1714 = vmax.xlane.f32.xlu0 %v3637_v51  ;;  %v1564_v10 = vpop.xlane.xlu0 %1563  ;;  %v3649_v42 = vsel %vm1671_vm13, %v1655_v24, -1e+30 }
 0x7a0   : > { %v1566_v4 = vpop.xlane.xlu1 %1565  ;;  %v1624_v53 = vadd.f32 %v3533_v48, %v1564_v10  ;;  %v1648_v52 = vmax.f32 %v1616_v29, %v1632_v63 }
 0x7a1   : > { %v1625_v57 = vadd.f32 %v3533_v48, %v1566_v4  ;;  %v1649_v12 = vmax.f32 %v1617_v31, %v1633_v50  ;;  %v1881_v31 = vpack.c.bf16 %v3529_v20, %v3527_v2 }
 0x7a2   : > { %v1640_v62 = vmul.f32 0.2, %v1624_v53  ;;  %v3651_v25 = vsel %vm1664_vm14, %v1648_v52, -1e+30 }
 0x7a3   : > { %v1641_v21 = vmul.f32 0.2, %v1625_v57  ;;  %1716 = vmax.xlane.f32.xlu1 %v3649_v42  ;;  %1702 = vmax.xlane.f32.xlu0 %v3651_v25  ;;  %v3659_v48 = vsel %vm1665_vm15, %v1649_v12, -1e+30 }
 0x7a4   : > { %v1656_v13 = vmax.f32 %v1624_v53, %v1640_v62  ;;  %2432 = vmatprep.subr.bf16.mxu0 %v1881_v31  ;;  %2464 = vmatprep.subr.bf16.mxu1 %v1881_v31 }
 0x7a5   : > { %v1657_v30 = vmax.f32 %v1625_v57, %v1641_v21  ;;  %2433 = vmatpush3.bf16.msra.mxu0 %v1881_v31  ;;  %2472 = vmatpush3.bf16.msra.mxu1 %v1881_v31 }
 0x7a6   : > { %v3661_v60 = vsel %vm1672_vm0, %v1656_v13, -1e+30 }
 0x7a7   : > { %1704 = vmax.xlane.f32.xlu1 %v3659_v48  ;;  %1718 = vmax.xlane.f32.xlu0 %v3661_v60  ;;  %v3666_v29 = vsel %vm1673_vm1, %v1657_v30, -1e+30 }
 0x7ab   : > { %1720 = vmax.xlane.f32.xlu1 %v3666_v29 }
 0x814   : > { %v1691_v56 = vpop.xlane.xlu0 %1690 }
 0x815   : > { %v1722_v24 = vsub.f32 %v3549_v18, %v1691_v56 }
 0x817   : > { %v1738_v63 = vmul.f32 1.442695, %v1722_v24 }
 0x818   : > { %v1693_v50 = vpop.xlane.xlu1 %1692  ;;  %v1707_v10 = vpop.xlane.xlu0 %1706 }
 0x819   : > { %2661 = vpow2.f32 %v1738_v63  ;;  %v1723_v4 = vsub.f32 %v3566_v38, %v1693_v50  ;;  %v1730_v23 = vsub.f32 %v3561_v46, %v1707_v10 }
 0x81b   : > { %v1740_v53 = vmul.f32 1.442695, %v1723_v4  ;;  %v1754_v57 = vmul.f32 1.442695, %v1730_v23 }
 0x81c   : > { %v1709_v52 = vpop.xlane.xlu1 %1708  ;;  %v1695_v62 = vpop.xlane.xlu0 %1694 }
 0x81d   : > { %2663 = vpow2.f32 %v1740_v53  ;;  %v1731_v2 = vsub.f32 %v3582_v19, %v1709_v52  ;;  %v1724_v20 = vsub.f32 %v3586_v27, %v1695_v62 }
 0x81e   : > { %2665 = vpow2.f32 %v1754_v57 }
 0x81f   : > { %v1756_v21 = vmul.f32 1.442695, %v1731_v2  ;;  %v1742_v18 = vmul.f32 1.442695, %v1724_v20 }
 0x820   : > { %v1697_v12 = vpop.xlane.xlu1 %1696  ;;  %v1711_v13 = vpop.xlane.xlu0 %1710 }
 0x821   : > { %2667 = vpow2.f32 %v1756_v21  ;;  %v1725_v30 = vsub.f32 %v3599_v15, %v1697_v12  ;;  %v1732_v38 = vsub.f32 %v3604_v55, %v1711_v13 }
 0x822   : > { %2669 = vpow2.f32 %v1742_v18 }
 0x823   : > { %v1744_v46 = vmul.f32 1.442695, %v1725_v30  ;;  %v1758_v31 = vmul.f32 1.442695, %v1732_v38 }
 0x824   : > { %v1713_v56 = vpop.xlane.xlu1 %1712  ;;  %v1699_v24 = vpop.xlane.xlu0 %1698 }
 0x825   : > { %2671 = vpow2.f32 %v1744_v46  ;;  %v1733_v19 = vsub.f32 %v3616_v28, %v1713_v56  ;;  %v1726_v27 = vsub.f32 %v3621_v17, %v1699_v24 }
 0x826   : > { %v2662_v63 = vpop.eup %2661  ;;  %2673 = vpow2.f32 %v1758_v31 }
 0x827   : > { %v1760_v50 = vmul.f32 1.442695, %v1733_v19  ;;  %v1746_v10 = vmul.f32 1.442695, %v1726_v27  ;;  %v3681_v4 = vmul.f32 %v2662_v63, %v3535_v22 }
 0x828   : > { %v1701_v15 = vpop.xlane.xlu1 %1700  ;;  %v1715_v23 = vpop.xlane.xlu0 %1714 }
 0x829   : > { %2675 = vpow2.f32 %v1760_v50  ;;  %v1727_v55 = vsub.f32 %v3634_v54, %v1701_v15  ;;  %v1734_v53 = vsub.f32 %v3637_v51, %v1715_v23  ;;  %1786 = vadd.xlane.f32.xlu0 %v3681_v4 }
 0x82a   : > { %v2664_v57 = vpop.eup %2663  ;;  %2677 = vpow2.f32 %v1746_v10 }
 0x82b   : > { %v2666_v28 = vpop.eup %2665  ;;  %v1748_v17 = vmul.f32 1.442695, %v1727_v55  ;;  %v1762_v52 = vmul.f32 1.442695, %v1734_v53  ;;  %v3687_v62 = vmul.f32 %v2664_v57, %v3542_v32 }
 0x82c   : > { %v1717_v2 = vpop.xlane.xlu1 %1716  ;;  %v1703_v22 = vpop.xlane.xlu0 %1702  ;;  %v3690_v20 = vmul.f32 %v2666_v28, %v3539_v41 }
 0x82d   : > { %2679 = vpow2.f32 %v1748_v17  ;;  %v1735_v54 = vsub.f32 %v3649_v42, %v1717_v2  ;;  %v1728_v51 = vsub.f32 %v3651_v25, %v1703_v22  ;;  %1788 = vadd.xlane.f32.xlu1 %v3687_v62 }
 0x82e   : > { %v2668_v21 = vpop.eup %2667  ;;  %2681 = vpow2.f32 %v1762_v52  ;;  %1802 = vadd.xlane.f32.xlu0 %v3690_v20 }
 0x82f   : > { %v2670_v18 = vpop.eup %2669  ;;  %v1764_v12 = vmul.f32 1.442695, %v1735_v54  ;;  %v1750_v32 = vmul.f32 1.442695, %v1728_v51  ;;  %v3697_v13 = vmul.f32 %v2668_v21, %v3547_v34 }
 0x830   : > { %v1705_v30 = vpop.xlane.xlu1 %1704  ;;  %v1719_v41 = vpop.xlane.xlu0 %1718  ;;  %v3700_v38 = vmul.f32 %v2670_v18, %v3553_v58  ;;  %v1880_v58 = vpack.c.bf16 %v3517_v9, %v3515_v37  ;;  %v1879_v9 = vpack.c.bf16 %v3505_v49, %v3503_v8  ;;  %v1878_v8 = vpack.c.bf16 %v3493_v6, %v3487_v16 }
 0x831   : > { %2683 = vpow2.f32 %v1764_v12  ;;  %v1729_v42 = vsub.f32 %v3659_v48, %v1705_v30  ;;  %v1736_v25 = vsub.f32 %v3661_v60, %v1719_v41  ;;  %1804 = vadd.xlane.f32.xlu1 %v3697_v13 }
 0x832   : > { %v2672_v46 = vpop.eup %2671  ;;  %2685 = vpow2.f32 %v1750_v32  ;;  %1790 = vadd.xlane.f32.xlu0 %v3700_v38  ;;  %2434 = vmatprep.subr.bf16.mxu0 %v1880_v58 }
 0x833   : > { %v2674_v31 = vpop.eup %2673  ;;  %v1752_v56 = vmul.f32 1.442695, %v1729_v42  ;;  %v1766_v34 = vmul.f32 1.442695, %v1736_v25  ;;  %v3707_v24 = vmul.f32 %v2672_v46, %v3564_v59  ;;  %2435 = vmatpush3.bf16.msra.mxu0 %v1880_v58  ;;  %2465 = vmatprep.subr.bf16.mxu1 %v1880_v58 }
 0x834   : > { %v1721_v19 = vpop.xlane.xlu1 %1720  ;;  %v3712_v48 = vmul.f32 %v2674_v31, %v3571_v40  ;;  %2473 = vmatpush3.bf16.msra.mxu1 %v1880_v58  ;;  %2436 = vmatprep.subr.bf16.mxu0 %v1879_v9 }
 0x835   : > { %2687 = vpow2.f32 %v1752_v56  ;;  %v1737_v60 = vsub.f32 %v3666_v29, %v1721_v19  ;;  %1792 = vadd.xlane.f32.xlu1 %v3707_v24  ;;  %2466 = vmatprep.subr.bf16.mxu1 %v1879_v9 }
 0x836   : > { %v2676_v27 = vpop.eup %2675  ;;  %2689 = vpow2.f32 %v1766_v34  ;;  %1806 = vadd.xlane.f32.xlu0 %v3712_v48 }
 0x837   : > { %v2678_v59 = vpop.eup %2677  ;;  %v1768_v63 = vmul.f32 1.442695, %v1737_v60  ;;  %v3718_v50 = vmul.f32 %v2676_v27, %v3576_v26  ;;  %2437 = vmatpush3.bf16.msra.mxu0 %v1879_v9 }
 0x838   : > { %v3721_v37 = vmul.f32 %v2678_v59, %v3591_v43  ;;  %2474 = vmatpush3.bf16.msra.mxu1 %v1879_v9  ;;  %2438 = vmatprep.subr.bf16.mxu0 %v1878_v8 }
 0x839   : > { %2691 = vpow2.f32 %v1768_v63  ;;  %1808 = vadd.xlane.f32.xlu1 %v3718_v50  ;;  %2467 = vmatprep.subr.bf16.mxu1 %v1878_v8 }
 0x83a   : > { %v2680_v40 = vpop.eup %2679  ;;  %1794 = vadd.xlane.f32.xlu0 %v3721_v37 }
 0x83b   : > { %v2682_v29 = vpop.eup %2681  ;;  %v3728_v10 = vmul.f32 %v2680_v40, %v3601_v44  ;;  %2439 = vmatpush3.bf16.msra.mxu0 %v1878_v8 }
 0x83c   : > { %v3731_v26 = vmul.f32 %v2682_v29, %v3609_v0  ;;  %v1877_v0 = vpack.c.bf16 %v3523_v33, %v3521_v11  ;;  %2475 = vmatpush3.bf16.msra.mxu1 %v1878_v8 }
 0x83d   : > { %1796 = vadd.xlane.f32.xlu1 %v3728_v10 }
 0x83e   : > { %v2684_v49 = vpop.eup %2683  ;;  %1810 = vadd.xlane.f32.xlu0 %v3731_v26  ;;  %2440 = vmatprep.subr.bf16.mxu0 %v1877_v0 }
 0x83f   : > { %v2686_v43 = vpop.eup %2685  ;;  %v3738_v15 = vmul.f32 %v2684_v49, %v3619_v5  ;;  %2441 = vmatpush3.bf16.msra.mxu0 %v1877_v0  ;;  %2468 = vmatprep.subr.bf16.mxu1 %v1877_v0 }
 0x840   : > { %v3741_v44 = vmul.f32 %v2686_v43, %v3626_v45  ;;  %v1876_v45 = vpack.c.bf16 %v3511_v7, %v3509_v3  ;;  %2476 = vmatpush3.bf16.msra.mxu1 %v1877_v0  ;;  %v1874_v3 = vpack.c.bf16 %v3491_v47, %v3482_v36 }
 0x841   : > { %1812 = vadd.xlane.f32.xlu1 %v3738_v15 }
 0x842   : > { %v2688_v16 = vpop.eup %2687  ;;  %1798 = vadd.xlane.f32.xlu0 %v3741_v44  ;;  %2442 = vmatprep.subr.bf16.mxu0 %v1876_v45 }
 0x843   : > { %v2690_v6 = vpop.eup %2689  ;;  %v3748_v23 = vmul.f32 %v2688_v16, %v3642_v35  ;;  %2443 = vmatpush3.bf16.msra.mxu0 %v1876_v45  ;;  %2469 = vmatprep.subr.bf16.mxu1 %v1876_v45  ;;  %v1875_v35 = vpack.c.bf16 %v3499_v61, %v3497_v1 }
 0x844   : > { %v3751_v5 = vmul.f32 %v2690_v6, %v3644_v39  ;;  %2477 = vmatpush3.bf16.msra.mxu1 %v1876_v45 }
 0x845   : > { %1800 = vadd.xlane.f32.xlu1 %v3748_v23  ;;  %2444 = vmatprep.subr.bf16.mxu0 %v1875_v35 }
 0x846   : > { %v2692_v11 = vpop.eup %2691  ;;  %1814 = vadd.xlane.f32.xlu0 %v3751_v5  ;;  %2470 = vmatprep.subr.bf16.mxu1 %v1875_v35 }
 0x847   : > { %v3758_v33 = vmul.f32 %v2692_v11, %v3657_v14  ;;  %2445 = vmatpush3.bf16.msra.mxu0 %v1875_v35 }
 0x848   : > { %2478 = vmatpush3.bf16.msra.mxu1 %v1875_v35  ;;  %2446 = vmatprep.subr.bf16.mxu0 %v1874_v3 }
 0x849   : > { %1816 = vadd.xlane.f32.xlu1 %v3758_v33  ;;  %2471 = vmatprep.subr.bf16.mxu1 %v1874_v3 }
 0x84b   : > { %2447 = vmatpush3.bf16.msra.mxu0 %v1874_v3 }
 0x84c   : > { %2479 = vmatpush3.bf16.msra.mxu1 %v1874_v3 }
 0x8b2   : > { %v1787_v7 = vpop.xlane.xlu0 %1786 }
 0x8b3   : > { %2693 = vrcp.f32 %v1787_v7 }
 0x8b6   : > { %v1789_v39 = vpop.xlane.xlu1 %1788 }
 0x8b7   : > { %2695 = vrcp.f32 %v1789_v39  ;;  %v1803_v14 = vpop.xlane.xlu0 %1802 }
 0x8b8   : > { %2697 = vrcp.f32 %v1803_v14 }
 0x8ba   : > { %v1805_v1 = vpop.xlane.xlu1 %1804 }
 0x8bb   : > { %2699 = vrcp.f32 %v1805_v1  ;;  %v1791_v61 = vpop.xlane.xlu0 %1790 }
 0x8bc   : > { %2701 = vrcp.f32 %v1791_v61 }
 0x8be   : > { %v1793_v55 = vpop.xlane.xlu1 %1792 }
 0x8bf   : > { %2703 = vrcp.f32 %v1793_v55  ;;  %v1807_v53 = vpop.xlane.xlu0 %1806 }
 0x8c0   : > { %2705 = vrcp.f32 %v1807_v53  ;;  %v2694_v36 = vpop.eup %2693 }
 0x8c1   : > { %v1834_v17 = vmul.f32 %v2694_v36, %v3681_v4 }
 0x8c2   : > { %v1809_v47 = vpop.xlane.xlu1 %1808 }
 0x8c3   : > { %2707 = vrcp.f32 %v1809_v47  ;;  %v1795_v57 = vpop.xlane.xlu0 %1794 }
 0x8c4   : > { %v2696_v28 = vpop.eup %2695  ;;  %2709 = vrcp.f32 %v1795_v57 }
 0x8c5   : > { %v1835_v52 = vmul.f32 %v2696_v28, %v3687_v62  ;;  %v2698_v2 = vpop.eup %2697 }
 0x8c6   : > { %v1797_v22 = vpop.xlane.xlu1 %1796  ;;  %v1842_v18 = vmul.f32 %v2698_v2, %v3690_v20 }
 0x8c7   : > { %2711 = vrcp.f32 %v1797_v22  ;;  %v1811_v54 = vpop.xlane.xlu0 %1810  ;;  %v1850_v51 = vpack.c.bf16 %v1835_v52, %v1834_v17 }
 0x8c8   : > { %v2700_v21 = vpop.eup %2699  ;;  %2713 = vrcp.f32 %v1811_v54 }
 0x8c9   : > { %2448 = vmatprep.mubr.bf16.mxu0 %v1850_v51  ;;  %v1843_v12 = vmul.f32 %v2700_v21, %v3697_v13  ;;  %v2702_v32 = vpop.eup %2701 }
 0x8ca   : > { %v1813_v30 = vpop.xlane.xlu1 %1812  ;;  %v1836_v62 = vmul.f32 %v2702_v32, %v3700_v38 }
 0x8cb   : > { %2715 = vrcp.f32 %v1813_v30  ;;  %v1799_v41 = vpop.xlane.xlu0 %1798  ;;  %v1854_v42 = vpack.c.bf16 %v1843_v12, %v1842_v18 }
 0x8cc   : > { %v2704_v4 = vpop.eup %2703  ;;  %2717 = vrcp.f32 %v1799_v41 }
 0x8cd   : > { %2456 = vmatprep.mubr.bf16.mxu1 %v1854_v42  ;;  %v1837_v25 = vmul.f32 %v2704_v4, %v3707_v24  ;;  %v2706_v46 = vpop.eup %2705 }
 0x8ce   : > { %v1801_v31 = vpop.xlane.xlu1 %1800  ;;  %v1844_v13 = vmul.f32 %v2706_v46, %v3712_v48 }
 0x8cf   : > { %2719 = vrcp.f32 %v1801_v31  ;;  %v1815_v56 = vpop.xlane.xlu0 %1814  ;;  %v1851_v34 = vpack.c.bf16 %v1837_v25, %v1836_v62 }
 0x8d0   : > { %v2708_v20 = vpop.eup %2707  ;;  %2721 = vrcp.f32 %v1815_v56 }
 0x8d1   : > { %2449 = vmatmul.mubr.bf16.vlgmr.msra.gmra.mxu0 %v1851_v34  ;;  %v1845_v58 = vmul.f32 %v2708_v20, %v3718_v50  ;;  %v2710_v19 = vpop.eup %2709 }
 0x8d2   : > { %v1817_v60 = vpop.xlane.xlu1 %1816  ;;  %v1838_v38 = vmul.f32 %v2710_v19, %v3721_v37 }
 0x8d3   : > { %2723 = vrcp.f32 %v1817_v60  ;;  %v1855_v27 = vpack.c.bf16 %v1845_v58, %v1844_v13 }
 0x8d4   : > { %v2712_v59 = vpop.eup %2711 }
 0x8d5   : > { %2457 = vmatmul.mubr.bf16.vlgmr.msra.gmra.mxu1 %v1855_v27  ;;  %v1839_v24 = vmul.f32 %v2712_v59, %v3728_v10  ;;  %v2714_v63 = vpop.eup %2713 }
 0x8d6   : > { %v1846_v29 = vmul.f32 %v2714_v63, %v3731_v26  ;;  %v2161_v26 = vld [vmem:[%s3818_s9] ss:$0 sm:$0xff] }
 0x8d7   : > { %v1852_v9 = vpack.c.bf16 %v1839_v24, %v1838_v38 }
 0x8d8   : > { %v2716_v40 = vpop.eup %2715 }
 0x8d9   : > { %2452 = vmatprep.mubr.bf16.mxu0 %v1852_v9  ;;  %v1847_v48 = vmul.f32 %v2716_v40, %v3738_v15  ;;  %v2718_v8 = vpop.eup %2717 }
 0x8da   : > { %v1840_v43 = vmul.f32 %v2718_v8, %v3741_v44 }
 0x8db   : > { %v1856_v50 = vpack.c.bf16 %v1847_v48, %v1846_v29 }
 0x8dc   : > { %v2720_v49 = vpop.eup %2719 }
 0x8dd   : > { %2460 = vmatprep.mubr.bf16.mxu1 %v1856_v50  ;;  %v1841_v0 = vmul.f32 %v2720_v49, %v3748_v23  ;;  %v2722_v16 = vpop.eup %2721 }
 0x8de   : > { %v1848_v10 = vmul.f32 %v2722_v16, %v3751_v5 }
 0x8df   : > { %v1853_v37 = vpack.c.bf16 %v1841_v0, %v1840_v43 }
 0x8e0   : > { %v2724_v6 = vpop.eup %2723 }
 0x8e1   : > { %2453 = vmatmul.mubr.bf16.gmra.mxu0 %v1853_v37  ;;  %v1849_v45 = vmul.f32 %v2724_v6, %v3758_v33 }
 0x8e3   : > { %v1857_v11 = vpack.c.bf16 %v1849_v45, %v1848_v10 }
 0x8e5   : > { %2461 = vmatmul.mubr.bf16.gmra.mxu1 %v1857_v11 }
 0x991   : > { %v2450_v15 = vpop.f32.mrf.mxu0 }
 0x992   : > { %v1932_v35 = vadd.f32 %v2450_v15, %v2161_v26 }
 0x993   : > { %v1923_v3 = vpop.f32.mrf.mxu0 }
 0x994   : > { %1988 = vst [vmem:[#allocation14 + $0x10] sm:$0xff] %v1932_v35  ;;  %v1924_v44 = vadd.f32 %v2161_v26, %v1923_v3 }
 0x995   : > { %v2451_v23 = vpop.f32.mrf.mxu0  ;;  %v2458_v7 = vpop.f32.mrf.mxu1 }
 0x996   : > { %1986 = vst [vmem:[#allocation14] sm:$0xff] %v1924_v44  ;;  %v1935_v39 = vadd.f32 %v2451_v23, %v2161_v26  ;;  %v1964_v14 = vadd.f32 %v2458_v7, %v2161_v26 }
 0x997   : > { %v1926_v1 = vpop.f32.mrf.mxu0  ;;  %v1955_v5 = vpop.f32.mrf.mxu1 }
 0x998   : > { %1989 = vst [vmem:[#allocation14 + $0x18] sm:$0xff] %v1935_v39  ;;  %1996 = vst [vmem:[#allocation14 + $0x50] sm:$0xff] %v1964_v14  ;;  %v1927_v33 = vadd.f32 %v2161_v26, %v1926_v1  ;;  %v1956_v61 = vadd.f32 %v2161_v26, %v1955_v5 }
 0x999   : > { %v2459_v55 = vpop.f32.mrf.mxu1 }
 0x99a   : > { %1987 = vst [vmem:[#allocation14 + $0x8] sm:$0xff] %v1927_v33  ;;  %1994 = vst [vmem:[#allocation14 + $0x40] sm:$0xff] %v1956_v61  ;;  %v1967_v53 = vadd.f32 %v2459_v55, %v2161_v26 }
 0x99b   : > { %v1958_v36 = vpop.f32.mrf.mxu1 }
 0x99c   : > { %1997 = vst [vmem:[#allocation14 + $0x58] sm:$0xff] %v1967_v53  ;;  %v1959_v47 = vadd.f32 %v2161_v26, %v1958_v36 }
 0x99e   : > { %1995 = vst [vmem:[#allocation14 + $0x48] sm:$0xff] %v1959_v47 }
 0x9a1   : > { %v2454_v57 = vpop.f32.mrf.mxu0 }
 0x9a2   : > { %v1948_v28 = vadd.f32 %v2454_v57, %v2161_v26 }
 0x9a3   : > { %v1939_v17 = vpop.f32.mrf.mxu0 }
 0x9a4   : > { %1992 = vst [vmem:[#allocation14 + $0x30] sm:$0xff] %v1948_v28  ;;  %v1940_v52 = vadd.f32 %v2161_v26, %v1939_v17 }
 0x9a5   : > { %v2455_v2 = vpop.f32.mrf.mxu0  ;;  %v2462_v22 = vpop.f32.mrf.mxu1 }
 0x9a6   : > { %1990 = vst [vmem:[#allocation14 + $0x20] sm:$0xff] %v1940_v52  ;;  %v1951_v54 = vadd.f32 %v2455_v2, %v2161_v26  ;;  %v1980_v51 = vadd.f32 %v2462_v22, %v2161_v26 }
 0x9a7   : > { %v1942_v21 = vpop.f32.mrf.mxu0  ;;  %v1971_v18 = vpop.f32.mrf.mxu1 }
 0x9a8   : > { %1993 = vst [vmem:[#allocation14 + $0x38] sm:$0xff] %v1951_v54  ;;  %2000 = vst [vmem:[#allocation14 + $0x70] sm:$0xff] %v1980_v51  ;;  %v1943_v12 = vadd.f32 %v2161_v26, %v1942_v21  ;;  %v1972_v32 = vadd.f32 %v2161_v26, %v1971_v18 }
 0x9a9   : > { %v2463_v30 = vpop.f32.mrf.mxu1 }
 0x9aa   : > { %1991 = vst [vmem:[#allocation14 + $0x28] sm:$0xff] %v1943_v12  ;;  %1998 = vst [vmem:[#allocation14 + $0x60] sm:$0xff] %v1972_v32  ;;  %v1983_v41 = vadd.f32 %v2463_v30, %v2161_v26 }
 0x9ab   : > { %v1974_v42 = vpop.f32.mrf.mxu1 }
 0x9ac   : > { %2001 = vst [vmem:[#allocation14 + $0x78] sm:$0xff] %v1983_v41  ;;  %v1975_v4 = vadd.f32 %v2161_v26, %v1974_v42 }
 0x9ae   : > { %1999 = vst [vmem:[#allocation14 + $0x68] sm:$0xff] %v1975_v4 }
 0x9af PF: > { %p3786_p4 = scmp.eq.s32.totalorder %s2124_s16, 1  ;;  %s2903_s20 = smov [#allocation14]  }
 0x9b0   : > { %s2017_s21 = sshll.u32 %s2903_s20, 4  ;;  %s2018_s21 = int_to_ptr.vmem [resolvable:$true] %s2017_s21 }
 0x9b1   : > { %s2829_s18 = scalar_lea.vmem %s2018_s21, 2048  ;;  %s2835_s19 = scalar_lea.vmem %s2018_s21, 4096 }
 0x9b2   : > { %p2830_p8 = scmp.ne.s32.totalorder %s2018_s21, %s2829_s18  ;;  %p2836_p11 = scmp.lt.s32.totalorder %s2018_s21, %s2018_s21 }
 0x9b3   : > { %p2837_p12 = scmp.lt.s32.totalorder %s2835_s19, %s2829_s18 }
 0x9b4   : > { %p2831_p9 = pnand %p2830_p8, %p3786_p4 }
 0x9b5   : > { %p2838_p6 = por %p2837_p12, %p2836_p11 }
 0x9b6   : > { %p2832_p10 = pneg %p2831_p9 }
 0x9b8   : > { %p2839_p13 = pnand %p2838_p6, %p2832_p10 }
 0x9ba   : > { %2842 = shalt.err (!%p2839_p13)
}
 0x9bb   : > { %s2904_s22 = smov 128   ;;  %s2905_s16 = smov 8  }
 0x9bc   : > { %2497 = dma.vmem_to_hbm [thread:$0]  (%p3786_p4), %s2018_s21, 2048, %s3819_s10, [#allocation8], %s2904_s22, %s2904_s22, %s2905_s16  }
 0x9bd PF: > { %p2526_p0 = scmp.ge.s32.totalorder %s2891_s15, 2  ;;  %p2527_p1 = scmp.eq.s32.totalorder %s2125_s17, 1 }
 0x9bf   : > { %p2514_p3 = pnand %p2527_p1, %p2526_p0 }
 0x9c1   : > { %p2515_p2 = pneg %p2514_p3 }
 0x9c3   : > { %2878 = dma.done.wait (%p2515_p2), [#allocation8], 2048  }
 0x9c4   : > { %2880 = vsyncadd (%p2515_p2), [#allocation8], 4294965248  ;;  %s26_s15 = sadd.s32 1, %s2891_s15   ;;  %s3825_s13 = smov %s2887_s14 }
 0x9c5   : > { %p23_p5 = scmp.ge.s32.totalorder %s26_s15, 4   ;;  %s3826_s14 = smov %s3828_s23 }
 0x9c7   :  { %25 = sbr.rel (!%p23_p5) target bundleno = 6 (0x6), region = 129 }
 0x9cc   :  { %2038 = vsyncpa [#allocation7], 1 }
 0x9cd   :  { %2040 = vsyncpa [#allocation7 + $0x1], 1 }
 0x9ce   :  { %2041 = vsyncpa [#allocation10], 1 }
 0x9cf   :  { %2042 = vsyncpa [#allocation13], 1 }
 0x9d0   :  { %2043 = vsyncpa [#allocation8], 1 }
 0x9d1   :  { %2045 = vsyncpa [#allocation8 + $0x1], 1 }

</bundles_post_ra>
